<compile_context>
chip_gen: v7x
topology: tpu7x:2x2x1
jax: 0.10.0
libtpu: 0.0.40
codegen_flags: <defaults>
</compile_context>

<pallas_src>
import functools

import jax
import jax.numpy as jnp
from jax.experimental import pallas as pl
from jax.experimental.pallas import tpu as pltpu


def _round_up(n: int, m: int) -> int:
    return ((n + m - 1) // m) * m


# ------------------------------ fused kernel ---------------------------------
def _wavefront_lstm_kernel(
    x_ref,        # (T, BT, D)   time-major input, one 8-row batch tile
    win0_ref,     # (D, 4*GW)    layer-0 input weights, packed gate layout
    wrec_ref,     # (GW, 4*GW)   block-bidiagonal recurrent/inter-layer weights
    b_ref,        # (1, 4*GW)    packed combined biases (all layers)
    lw_ref,       # (GW, O)      Linear head weight, zero outside last layer's rows
    lb_ref,       # (1, O)       Linear head bias
    out_ref,      # (BT, O)      log-probs
    *, T: int, BT: int, H: int, L: int, GW: int,
):
    NG = 4 * GW
    # Bias broadcast hoisted out of the loop (JAX doesn't CSE broadcast_in_dim).
    bias = jnp.broadcast_to(b_ref[...], (BT, NG))        # (BT, 4*GW)
    lane = jax.lax.broadcasted_iota(jnp.int32, (BT, GW), 1)

    # Packed state: lanes [l*H:(l+1)*H] hold layer l; pad lanes stay exactly 0.
    hcat = jnp.zeros((BT, GW), jnp.float32)
    ccat = jnp.zeros((BT, GW), jnp.float32)

    # Wavefront: at step s, layer l computes its timestep t = s - l.
    for s in range(T + L - 1):
        # Layer-0 input projection: depends only on x, so it sits off the
        # recurrent dependency chain (MXU pipelining hides it).
        if s < T:
            g_in = jnp.dot(x_ref[s], win0_ref[...],
                           preferred_element_type=jnp.float32) + bias
        else:
            g_in = bias                                   # drained steps: bias only
        if s == 0:
            gates = g_in                                  # hcat is all zeros
        else:
            gates = jnp.dot(hcat, wrec_ref[...],
                            preferred_element_type=jnp.float32) + g_in

        # Gate groups are [i | f | o | g], each a full 128-lane vreg:
        # all extractions below are 128-aligned vreg picks (no XLU rotates).
        sig = jax.nn.sigmoid(gates[:, : 3 * GW])          # i, f, o in one EUP pass
        g_g = jnp.tanh(gates[:, 3 * GW:])                 # g
        i_g = sig[:, 0 * GW:1 * GW]
        f_g = sig[:, 1 * GW:2 * GW]
        o_g = sig[:, 2 * GW:3 * GW]

        c_new = f_g * ccat + i_g * g_g
        h_new = o_g * jnp.tanh(c_new)

        if s < L - 1:
            # Wavefront fill: layers that haven't started keep zero init state.
            active = lane < (s + 1) * H
            ccat = jnp.where(active, c_new, ccat)
            hcat = jnp.where(active, h_new, hcat)
        else:
            ccat, hcat = c_new, h_new
        # Steps s >= T overwrite layer-<L-1 slots with finite garbage that is
        # never consumed by any value we return (head weight rows are zero).

    # Linear head: lw is zero outside rows [(L-1)*H : L*H], so no lane slice of
    # hcat is needed.  Then a numerically-stable LogSoftmax over the output dim.
    logits = jnp.dot(hcat, lw_ref[...],
                     preferred_element_type=jnp.float32) + lb_ref[...]
    m = jnp.max(logits, axis=-1, keepdims=True)
    shifted = logits - m
    lse = jnp.log(jnp.sum(jnp.exp(shifted), axis=-1, keepdims=True))
    out_ref[...] = (shifted - lse).astype(out_ref.dtype)


# --------------------------- weight packing (layout only) ---------------------
def _pack_params(params, GW):
    """Pack per-layer LSTM weights into the wavefront block-bidiagonal layout.

    Packed gate-group order is [i, f, o, g]; within each GW-wide group, lanes
    [l*H:(l+1)*H] belong to layer l, the rest is zero padding.  Pure layout
    plumbing (no compute hoisted out of the kernel).
    """
    lstm = params["lstm"]
    L = len(lstm)
    H = lstm[0]["w_hh"].shape[0]
    D = lstm[0]["w_ih"].shape[0]
    NG = 4 * GW
    grp_of = {0: 0, 1: 1, 2: 3, 3: 2}   # orig gate idx (i,f,g,o) -> packed group

    w_rec = jnp.zeros((GW, NG), jnp.float32)
    w_in0 = jnp.zeros((D, NG), jnp.float32)
    b_pk = jnp.zeros((1, NG), jnp.float32)
    for l, lp in enumerate(lstm):
        for q in range(4):
            gp = grp_of[q]
            src = slice(q * H, (q + 1) * H)
            dst = slice(gp * GW + l * H, gp * GW + (l + 1) * H)
            # recurrent weight of layer l (diagonal block)
            w_rec = w_rec.at[l * H:(l + 1) * H, dst].set(lp["w_hh"][:, src])
            # input weight of layer l: layer 0 from x, layers >0 from h_{l-1}
            if l == 0:
                w_in0 = w_in0.at[:, dst].set(lp["w_ih"][:, src])
            else:
                w_rec = w_rec.at[(l - 1) * H:l * H, dst].set(lp["w_ih"][:, src])
            b_pk = b_pk.at[0, dst].set(lp["b"][0, src])

    lin_w, lin_b = params["linear"]["w"], params["linear"]["b"]
    O = lin_w.shape[1]
    lw_pk = jnp.zeros((GW, O), jnp.float32).at[(L - 1) * H:L * H, :].set(lin_w)
    return w_in0, w_rec, b_pk, lw_pk, lin_b


# --------------------------------- wrapper ------------------------------------
@jax.jit
def lstm_fixed_len_forward(params, x):
    """x: (B, T, input_size) float32, batch_first — matches the PyTorch module."""
    B, T, D = x.shape
    lstm = params["lstm"]
    L = len(lstm)
    H = lstm[0]["w_hh"].shape[0]
    O = params["linear"]["w"].shape[1]

    BT = 8                                   # batch tile = one sublane group
    Bp = max(BT, _round_up(B, BT))           # pad batch to full sublane tiles
    GW = _round_up(L * H, 128)               # lane-aligned packed-hidden width

    w_in0, w_rec, b_pk, lw_pk, lb = _pack_params(params, GW)

    # time-major, batch padded (padded rows never mix with real rows).
    x_tm = jnp.transpose(x, (1, 0, 2))                     # (T, B, D)
    x_tm = jnp.pad(x_tm, ((0, 0), (0, Bp - B), (0, 0)))    # (T, Bp, D)

    kernel = functools.partial(_wavefront_lstm_kernel,
                               T=T, BT=BT, H=H, L=L, GW=GW)

    out_padded = pl.pallas_call(
        kernel,
        out_shape=jax.ShapeDtypeStruct((Bp, O), jnp.float32),
        grid=(Bp // BT,),                    # parallel batch tiles (v7x dual-TC)
        in_specs=[
            pl.BlockSpec((T, BT, D), lambda j: (0, j, 0)),
            pl.BlockSpec((D, 4 * GW), lambda j: (0, 0)),
            pl.BlockSpec((GW, 4 * GW), lambda j: (0, 0)),
            pl.BlockSpec((1, 4 * GW), lambda j: (0, 0)),
            pl.BlockSpec((GW, O), lambda j: (0, 0)),
            pl.BlockSpec((1, O), lambda j: (0, 0)),
        ],
        out_specs=pl.BlockSpec((BT, O), lambda j: (j, 0)),
        compiler_params=pltpu.CompilerParams(
            dimension_semantics=("parallel",)),
    )(x_tm, w_in0, w_rec, b_pk, lw_pk, lb)
    return out_padded[:B]


# ------------------------------ params & reference ----------------------------
def init_params(key, input_size, hidden_dim, output_size, n_layers=3):
    """PyTorch-style uniform(+-1/sqrt(hidden_dim)) init, weights stored as (in, 4H)."""
    params = {"lstm": [], "linear": {}}
    bound = 1.0 / jnp.sqrt(jnp.float32(hidden_dim))
    for layer in range(n_layers):
        d_in = input_size if layer == 0 else hidden_dim
        key, k1, k2, k3, k4 = jax.random.split(key, 5)
        w_ih = jax.random.uniform(k1, (d_in, 4 * hidden_dim), jnp.float32, -bound, bound)
        w_hh = jax.random.uniform(k2, (hidden_dim, 4 * hidden_dim), jnp.float32, -bound, bound)
        b_ih = jax.random.uniform(k3, (4 * hidden_dim,), jnp.float32, -bound, bound)
        b_hh = jax.random.uniform(k4, (4 * hidden_dim,), jnp.float32, -bound, bound)
        params["lstm"].append({"w_ih": w_ih, "w_hh": w_hh, "b": (b_ih + b_hh)[None, :]})
    key, k1, k2 = jax.random.split(key, 3)
    lb = 1.0 / jnp.sqrt(jnp.float32(hidden_dim))
    params["linear"]["w"] = jax.random.uniform(k1, (hidden_dim, output_size), jnp.float32, -lb, lb)
    params["linear"]["b"] = jax.random.uniform(k2, (output_size,), jnp.float32, -lb, lb)[None, :]
    return params


def _reference_forward(params, x):
    """Pure-JAX (non-Pallas) reference of the same eval-mode forward."""
    B, T, _ = x.shape
    H = params["lstm"][0]["w_hh"].shape[0]
    hp = jax.lax.Precision.HIGHEST
    h_seq = jnp.transpose(x, (1, 0, 2))  # (T, B, D)
    for lp in params["lstm"]:
        h = jnp.zeros((B, H), jnp.float32)
        c = jnp.zeros((B, H), jnp.float32)
        outs = []
        for t in range(T):
            g = (jnp.dot(h_seq[t], lp["w_ih"], precision=hp)
                 + jnp.dot(h, lp["w_hh"], precision=hp) + lp["b"])
            i = jax.nn.sigmoid(g[:, :H])
            f = jax.nn.sigmoid(g[:, H:2 * H])
            gg = jnp.tanh(g[:, 2 * H:3 * H])
            o = jax.nn.sigmoid(g[:, 3 * H:])
            c = f * c + i * gg
            h = o * jnp.tanh(c)
            outs.append(h)
        h_seq = jnp.stack(outs, axis=0)
    logits = jnp.dot(h_seq[-1], params["linear"]["w"], precision=hp) + params["linear"]["b"]
    return jax.nn.log_softmax(logits, axis=-1)


# ----------------------------------- main --------------------------------------
if __name__ == "__main__":
    B, T = 2, 8
    INPUT_SIZE, HIDDEN_DIM, OUTPUT_SIZE, N_LAYERS = 16, 32, 8, 3

    key = jax.random.PRNGKey(0)
    key, pkey, xkey = jax.random.split(key, 3)
    params = init_params(pkey, INPUT_SIZE, HIDDEN_DIM, OUTPUT_SIZE, N_LAYERS)
    x = jax.random.normal(xkey, (B, T, INPUT_SIZE), jnp.float32)

    out = lstm_fixed_len_forward(params, x)
    jax.block_until_ready(out)

    assert out.shape == (B, OUTPUT_SIZE), out.shape
    assert bool(jnp.all(jnp.isfinite(out)))
    # rows of a log-softmax should exponentiate-and-sum to 1
    assert jnp.allclose(jnp.exp(out).sum(axis=1), 1.0, atol=1e-4)
    # cross-check against the pure-JAX reference of the same eval-mode forward
    ref = _reference_forward(params, x)
    assert jnp.allclose(out, ref, atol=1e-3, rtol=1e-3), float(jnp.max(jnp.abs(out - ref)))
    print("KERNEL_OK")
</pallas_src>

<mosaic_0001>
module attributes {stable_mosaic.version = 11 : i64} {
  func.func @_wavefront_lstm_kernel(%arg0: i32, %arg1: memref<8x8x16xf32, #tpu.memory_space<vmem>>, %arg2: memref<16x512xf32, #tpu.memory_space<vmem>>, %arg3: memref<128x512xf32, #tpu.memory_space<vmem>>, %arg4: memref<1x512xf32, #tpu.memory_space<vmem>>, %arg5: memref<128x8xf32, #tpu.memory_space<vmem>>, %arg6: memref<1x8xf32, #tpu.memory_space<vmem>>, %arg7: memref<8x8xf32, #tpu.memory_space<vmem>>) attributes {dimension_semantics = [#tpu.dimension_semantics<parallel>], iteration_bounds = array<i64: 1>, scalar_prefetch = 0 : i64, scratch_operands = 0 : i64, tpu.core_type = #tpu.core_type<tc>, window_params = [{transform_indices = @transform_0, window_bounds = array<i64: 8, 8, 16>}, {pipeline_mode = #tpu.pipeline_mode<synchronous>, transform_indices = @transform_1, window_bounds = array<i64: 16, 512>}, {pipeline_mode = #tpu.pipeline_mode<synchronous>, transform_indices = @transform_2, window_bounds = array<i64: 128, 512>}, {pipeline_mode = #tpu.pipeline_mode<synchronous>, transform_indices = @transform_3, window_bounds = array<i64: 1, 512>}, {pipeline_mode = #tpu.pipeline_mode<synchronous>, transform_indices = @transform_4, window_bounds = array<i64: 128, 8>}, {pipeline_mode = #tpu.pipeline_mode<synchronous>, transform_indices = @transform_5, window_bounds = array<i64: 1, 8>}, {transform_indices = @transform_6, window_bounds = array<i64: 8, 8>}]} {
    %c0 = arith.constant 0 : index
    %c0_0 = arith.constant 0 : index
    %0 = vector.load %arg4[%c0, %c0_0] : memref<1x512xf32, #tpu.memory_space<vmem>>, vector<1x512xf32>
    %1 = vector.shape_cast %0 : vector<1x512xf32> to vector<1x512xf32>
    %2 = vector.broadcast %1 : vector<1x512xf32> to vector<8x512xf32>
    %3 = tpu.iota {dimensions = array<i32: 1>} : vector<8x128xi32>
    %cst = arith.constant 0.000000e+00 : f32
    %4 = vector.broadcast %cst : f32 to vector<8x128xf32>
    %cst_1 = arith.constant 0.000000e+00 : f32
    %5 = vector.broadcast %cst_1 : f32 to vector<8x128xf32>
    %c0_2 = arith.constant 0 : index
    %c0_3 = arith.constant 0 : index
    %c0_4 = arith.constant 0 : index
    %6 = vector.load %arg1[%c0_2, %c0_3, %c0_4] : memref<8x8x16xf32, #tpu.memory_space<vmem>>, vector<1x8x16xf32>
    %7 = vector.shape_cast %6 : vector<1x8x16xf32> to vector<8x16xf32>
    %c0_5 = arith.constant 0 : index
    %c0_6 = arith.constant 0 : index
    %8 = vector.load %arg2[%c0_5, %c0_6] : memref<16x512xf32, #tpu.memory_space<vmem>>, vector<16x512xf32>
    %cst_7 = arith.constant dense<0.000000e+00> : vector<8x512xf32>
    %9 = tpu.matmul %7, %8, %cst_7 {dimension_numbers = #tpu.dot_dimension_numbers<[1], [0], [0], [1], [0, 0, 1, 1], [], []>} : vector<8x16xf32>, vector<16x512xf32>, vector<8x512xf32> -> vector<8x512xf32>
    %10 = arith.addf %9, %2 : vector<8x512xf32>
    %11 = vector.extract_strided_slice %10 {offsets = [0, 0], sizes = [8, 384], strides = [1, 1]} : vector<8x512xf32> to vector<8x384xf32>
    %12 = arith.negf %11 : vector<8x384xf32>
    %13 = math.exp %12 : vector<8x384xf32>
    %cst_8 = arith.constant 1.000000e+00 : f32
    %14 = vector.broadcast %cst_8 : f32 to vector<8x384xf32>
    %15 = arith.addf %14, %13 : vector<8x384xf32>
    %16 = arith.divf %14, %15 : vector<8x384xf32>
    %17 = vector.extract_strided_slice %10 {offsets = [0, 384], sizes = [8, 128], strides = [1, 1]} : vector<8x512xf32> to vector<8x128xf32>
    %18 = math.tanh %17 : vector<8x128xf32>
    %19 = vector.extract_strided_slice %16 {offsets = [0, 0], sizes = [8, 128], strides = [1, 1]} : vector<8x384xf32> to vector<8x128xf32>
    %20 = vector.extract_strided_slice %16 {offsets = [0, 128], sizes = [8, 128], strides = [1, 1]} : vector<8x384xf32> to vector<8x128xf32>
    %21 = vector.extract_strided_slice %16 {offsets = [0, 256], sizes = [8, 128], strides = [1, 1]} : vector<8x384xf32> to vector<8x128xf32>
    %22 = arith.mulf %20, %5 : vector<8x128xf32>
    %23 = arith.mulf %19, %18 : vector<8x128xf32>
    %24 = arith.addf %22, %23 : vector<8x128xf32>
    %25 = math.tanh %24 : vector<8x128xf32>
    %26 = arith.mulf %21, %25 : vector<8x128xf32>
    %c32_i32 = arith.constant 32 : i32
    %27 = vector.broadcast %c32_i32 : i32 to vector<8x128xi32>
    %28 = arith.cmpi slt, %3, %27 : vector<8x128xi32>
    %29 = arith.select %28, %24, %5 : vector<8x128xi1>, vector<8x128xf32>
    %30 = arith.select %28, %26, %4 : vector<8x128xi1>, vector<8x128xf32>
    %c1 = arith.constant 1 : index
    %c0_9 = arith.constant 0 : index
    %c0_10 = arith.constant 0 : index
    %31 = vector.load %arg1[%c1, %c0_9, %c0_10] : memref<8x8x16xf32, #tpu.memory_space<vmem>>, vector<1x8x16xf32>
    %32 = vector.shape_cast %31 : vector<1x8x16xf32> to vector<8x16xf32>
    %c0_11 = arith.constant 0 : index
    %c0_12 = arith.constant 0 : index
    %33 = vector.load %arg2[%c0_11, %c0_12] : memref<16x512xf32, #tpu.memory_space<vmem>>, vector<16x512xf32>
    %cst_13 = arith.constant dense<0.000000e+00> : vector<8x512xf32>
    %34 = tpu.matmul %32, %33, %cst_13 {dimension_numbers = #tpu.dot_dimension_numbers<[1], [0], [0], [1], [0, 0, 1, 1], [], []>} : vector<8x16xf32>, vector<16x512xf32>, vector<8x512xf32> -> vector<8x512xf32>
    %35 = arith.addf %34, %2 : vector<8x512xf32>
    %c0_14 = arith.constant 0 : index
    %c0_15 = arith.constant 0 : index
    %36 = vector.load %arg3[%c0_14, %c0_15] : memref<128x512xf32, #tpu.memory_space<vmem>>, vector<128x512xf32>
    %cst_16 = arith.constant dense<0.000000e+00> : vector<8x512xf32>
    %37 = tpu.matmul %30, %36, %cst_16 {dimension_numbers = #tpu.dot_dimension_numbers<[1], [0], [0], [1], [0, 0, 1, 1], [], []>} : vector<8x128xf32>, vector<128x512xf32>, vector<8x512xf32> -> vector<8x512xf32>
    %38 = arith.addf %37, %35 : vector<8x512xf32>
    %39 = vector.extract_strided_slice %38 {offsets = [0, 0], sizes = [8, 384], strides = [1, 1]} : vector<8x512xf32> to vector<8x384xf32>
    %40 = arith.negf %39 : vector<8x384xf32>
    %41 = math.exp %40 : vector<8x384xf32>
    %cst_17 = arith.constant 1.000000e+00 : f32
    %42 = vector.broadcast %cst_17 : f32 to vector<8x384xf32>
    %43 = arith.addf %42, %41 : vector<8x384xf32>
    %44 = arith.divf %42, %43 : vector<8x384xf32>
    %45 = vector.extract_strided_slice %38 {offsets = [0, 384], sizes = [8, 128], strides = [1, 1]} : vector<8x512xf32> to vector<8x128xf32>
    %46 = math.tanh %45 : vector<8x128xf32>
    %47 = vector.extract_strided_slice %44 {offsets = [0, 0], sizes = [8, 128], strides = [1, 1]} : vector<8x384xf32> to vector<8x128xf32>
    %48 = vector.extract_strided_slice %44 {offsets = [0, 128], sizes = [8, 128], strides = [1, 1]} : vector<8x384xf32> to vector<8x128xf32>
    %49 = vector.extract_strided_slice %44 {offsets = [0, 256], sizes = [8, 128], strides = [1, 1]} : vector<8x384xf32> to vector<8x128xf32>
    %50 = arith.mulf %48, %29 : vector<8x128xf32>
    %51 = arith.mulf %47, %46 : vector<8x128xf32>
    %52 = arith.addf %50, %51 : vector<8x128xf32>
    %53 = math.tanh %52 : vector<8x128xf32>
    %54 = arith.mulf %49, %53 : vector<8x128xf32>
    %c64_i32 = arith.constant 64 : i32
    %55 = vector.broadcast %c64_i32 : i32 to vector<8x128xi32>
    %56 = arith.cmpi slt, %3, %55 : vector<8x128xi32>
    %57 = arith.select %56, %52, %29 : vector<8x128xi1>, vector<8x128xf32>
    %58 = arith.select %56, %54, %30 : vector<8x128xi1>, vector<8x128xf32>
    %c2 = arith.constant 2 : index
    %c0_18 = arith.constant 0 : index
    %c0_19 = arith.constant 0 : index
    %59 = vector.load %arg1[%c2, %c0_18, %c0_19] : memref<8x8x16xf32, #tpu.memory_space<vmem>>, vector<1x8x16xf32>
    %60 = vector.shape_cast %59 : vector<1x8x16xf32> to vector<8x16xf32>
    %c0_20 = arith.constant 0 : index
    %c0_21 = arith.constant 0 : index
    %61 = vector.load %arg2[%c0_20, %c0_21] : memref<16x512xf32, #tpu.memory_space<vmem>>, vector<16x512xf32>
    %cst_22 = arith.constant dense<0.000000e+00> : vector<8x512xf32>
    %62 = tpu.matmul %60, %61, %cst_22 {dimension_numbers = #tpu.dot_dimension_numbers<[1], [0], [0], [1], [0, 0, 1, 1], [], []>} : vector<8x16xf32>, vector<16x512xf32>, vector<8x512xf32> -> vector<8x512xf32>
    %63 = arith.addf %62, %2 : vector<8x512xf32>
    %c0_23 = arith.constant 0 : index
    %c0_24 = arith.constant 0 : index
    %64 = vector.load %arg3[%c0_23, %c0_24] : memref<128x512xf32, #tpu.memory_space<vmem>>, vector<128x512xf32>
    %cst_25 = arith.constant dense<0.000000e+00> : vector<8x512xf32>
    %65 = tpu.matmul %58, %64, %cst_25 {dimension_numbers = #tpu.dot_dimension_numbers<[1], [0], [0], [1], [0, 0, 1, 1], [], []>} : vector<8x128xf32>, vector<128x512xf32>, vector<8x512xf32> -> vector<8x512xf32>
    %66 = arith.addf %65, %63 : vector<8x512xf32>
    %67 = vector.extract_strided_slice %66 {offsets = [0, 0], sizes = [8, 384], strides = [1, 1]} : vector<8x512xf32> to vector<8x384xf32>
    %68 = arith.negf %67 : vector<8x384xf32>
    %69 = math.exp %68 : vector<8x384xf32>
    %cst_26 = arith.constant 1.000000e+00 : f32
    %70 = vector.broadcast %cst_26 : f32 to vector<8x384xf32>
    %71 = arith.addf %70, %69 : vector<8x384xf32>
    %72 = arith.divf %70, %71 : vector<8x384xf32>
    %73 = vector.extract_strided_slice %66 {offsets = [0, 384], sizes = [8, 128], strides = [1, 1]} : vector<8x512xf32> to vector<8x128xf32>
    %74 = math.tanh %73 : vector<8x128xf32>
    %75 = vector.extract_strided_slice %72 {offsets = [0, 0], sizes = [8, 128], strides = [1, 1]} : vector<8x384xf32> to vector<8x128xf32>
    %76 = vector.extract_strided_slice %72 {offsets = [0, 128], sizes = [8, 128], strides = [1, 1]} : vector<8x384xf32> to vector<8x128xf32>
    %77 = vector.extract_strided_slice %72 {offsets = [0, 256], sizes = [8, 128], strides = [1, 1]} : vector<8x384xf32> to vector<8x128xf32>
    %78 = arith.mulf %76, %57 : vector<8x128xf32>
    %79 = arith.mulf %75, %74 : vector<8x128xf32>
    %80 = arith.addf %78, %79 : vector<8x128xf32>
    %81 = math.tanh %80 : vector<8x128xf32>
    %82 = arith.mulf %77, %81 : vector<8x128xf32>
    %c3 = arith.constant 3 : index
    %c0_27 = arith.constant 0 : index
    %c0_28 = arith.constant 0 : index
    %83 = vector.load %arg1[%c3, %c0_27, %c0_28] : memref<8x8x16xf32, #tpu.memory_space<vmem>>, vector<1x8x16xf32>
    %84 = vector.shape_cast %83 : vector<1x8x16xf32> to vector<8x16xf32>
    %c0_29 = arith.constant 0 : index
    %c0_30 = arith.constant 0 : index
    %85 = vector.load %arg2[%c0_29, %c0_30] : memref<16x512xf32, #tpu.memory_space<vmem>>, vector<16x512xf32>
    %cst_31 = arith.constant dense<0.000000e+00> : vector<8x512xf32>
    %86 = tpu.matmul %84, %85, %cst_31 {dimension_numbers = #tpu.dot_dimension_numbers<[1], [0], [0], [1], [0, 0, 1, 1], [], []>} : vector<8x16xf32>, vector<16x512xf32>, vector<8x512xf32> -> vector<8x512xf32>
    %87 = arith.addf %86, %2 : vector<8x512xf32>
    %c0_32 = arith.constant 0 : index
    %c0_33 = arith.constant 0 : index
    %88 = vector.load %arg3[%c0_32, %c0_33] : memref<128x512xf32, #tpu.memory_space<vmem>>, vector<128x512xf32>
    %cst_34 = arith.constant dense<0.000000e+00> : vector<8x512xf32>
    %89 = tpu.matmul %82, %88, %cst_34 {dimension_numbers = #tpu.dot_dimension_numbers<[1], [0], [0], [1], [0, 0, 1, 1], [], []>} : vector<8x128xf32>, vector<128x512xf32>, vector<8x512xf32> -> vector<8x512xf32>
    %90 = arith.addf %89, %87 : vector<8x512xf32>
    %91 = vector.extract_strided_slice %90 {offsets = [0, 0], sizes = [8, 384], strides = [1, 1]} : vector<8x512xf32> to vector<8x384xf32>
    %92 = arith.negf %91 : vector<8x384xf32>
    %93 = math.exp %92 : vector<8x384xf32>
    %cst_35 = arith.constant 1.000000e+00 : f32
    %94 = vector.broadcast %cst_35 : f32 to vector<8x384xf32>
    %95 = arith.addf %94, %93 : vector<8x384xf32>
    %96 = arith.divf %94, %95 : vector<8x384xf32>
    %97 = vector.extract_strided_slice %90 {offsets = [0, 384], sizes = [8, 128], strides = [1, 1]} : vector<8x512xf32> to vector<8x128xf32>
    %98 = math.tanh %97 : vector<8x128xf32>
    %99 = vector.extract_strided_slice %96 {offsets = [0, 0], sizes = [8, 128], strides = [1, 1]} : vector<8x384xf32> to vector<8x128xf32>
    %100 = vector.extract_strided_slice %96 {offsets = [0, 128], sizes = [8, 128], strides = [1, 1]} : vector<8x384xf32> to vector<8x128xf32>
    %101 = vector.extract_strided_slice %96 {offsets = [0, 256], sizes = [8, 128], strides = [1, 1]} : vector<8x384xf32> to vector<8x128xf32>
    %102 = arith.mulf %100, %80 : vector<8x128xf32>
    %103 = arith.mulf %99, %98 : vector<8x128xf32>
    %104 = arith.addf %102, %103 : vector<8x128xf32>
    %105 = math.tanh %104 : vector<8x128xf32>
    %106 = arith.mulf %101, %105 : vector<8x128xf32>
    %c4 = arith.constant 4 : index
    %c0_36 = arith.constant 0 : index
    %c0_37 = arith.constant 0 : index
    %107 = vector.load %arg1[%c4, %c0_36, %c0_37] : memref<8x8x16xf32, #tpu.memory_space<vmem>>, vector<1x8x16xf32>
    %108 = vector.shape_cast %107 : vector<1x8x16xf32> to vector<8x16xf32>
    %c0_38 = arith.constant 0 : index
    %c0_39 = arith.constant 0 : index
    %109 = vector.load %arg2[%c0_38, %c0_39] : memref<16x512xf32, #tpu.memory_space<vmem>>, vector<16x512xf32>
    %cst_40 = arith.constant dense<0.000000e+00> : vector<8x512xf32>
    %110 = tpu.matmul %108, %109, %cst_40 {dimension_numbers = #tpu.dot_dimension_numbers<[1], [0], [0], [1], [0, 0, 1, 1], [], []>} : vector<8x16xf32>, vector<16x512xf32>, vector<8x512xf32> -> vector<8x512xf32>
    %111 = arith.addf %110, %2 : vector<8x512xf32>
    %c0_41 = arith.constant 0 : index
    %c0_42 = arith.constant 0 : index
    %112 = vector.load %arg3[%c0_41, %c0_42] : memref<128x512xf32, #tpu.memory_space<vmem>>, vector<128x512xf32>
    %cst_43 = arith.constant dense<0.000000e+00> : vector<8x512xf32>
    %113 = tpu.matmul %106, %112, %cst_43 {dimension_numbers = #tpu.dot_dimension_numbers<[1], [0], [0], [1], [0, 0, 1, 1], [], []>} : vector<8x128xf32>, vector<128x512xf32>, vector<8x512xf32> -> vector<8x512xf32>
    %114 = arith.addf %113, %111 : vector<8x512xf32>
    %115 = vector.extract_strided_slice %114 {offsets = [0, 0], sizes = [8, 384], strides = [1, 1]} : vector<8x512xf32> to vector<8x384xf32>
    %116 = arith.negf %115 : vector<8x384xf32>
    %117 = math.exp %116 : vector<8x384xf32>
    %cst_44 = arith.constant 1.000000e+00 : f32
    %118 = vector.broadcast %cst_44 : f32 to vector<8x384xf32>
    %119 = arith.addf %118, %117 : vector<8x384xf32>
    %120 = arith.divf %118, %119 : vector<8x384xf32>
    %121 = vector.extract_strided_slice %114 {offsets = [0, 384], sizes = [8, 128], strides = [1, 1]} : vector<8x512xf32> to vector<8x128xf32>
    %122 = math.tanh %121 : vector<8x128xf32>
    %123 = vector.extract_strided_slice %120 {offsets = [0, 0], sizes = [8, 128], strides = [1, 1]} : vector<8x384xf32> to vector<8x128xf32>
    %124 = vector.extract_strided_slice %120 {offsets = [0, 128], sizes = [8, 128], strides = [1, 1]} : vector<8x384xf32> to vector<8x128xf32>
    %125 = vector.extract_strided_slice %120 {offsets = [0, 256], sizes = [8, 128], strides = [1, 1]} : vector<8x384xf32> to vector<8x128xf32>
    %126 = arith.mulf %124, %104 : vector<8x128xf32>
    %127 = arith.mulf %123, %122 : vector<8x128xf32>
    %128 = arith.addf %126, %127 : vector<8x128xf32>
    %129 = math.tanh %128 : vector<8x128xf32>
    %130 = arith.mulf %125, %129 : vector<8x128xf32>
    %c5 = arith.constant 5 : index
    %c0_45 = arith.constant 0 : index
    %c0_46 = arith.constant 0 : index
    %131 = vector.load %arg1[%c5, %c0_45, %c0_46] : memref<8x8x16xf32, #tpu.memory_space<vmem>>, vector<1x8x16xf32>
    %132 = vector.shape_cast %131 : vector<1x8x16xf32> to vector<8x16xf32>
    %c0_47 = arith.constant 0 : index
    %c0_48 = arith.constant 0 : index
    %133 = vector.load %arg2[%c0_47, %c0_48] : memref<16x512xf32, #tpu.memory_space<vmem>>, vector<16x512xf32>
    %cst_49 = arith.constant dense<0.000000e+00> : vector<8x512xf32>
    %134 = tpu.matmul %132, %133, %cst_49 {dimension_numbers = #tpu.dot_dimension_numbers<[1], [0], [0], [1], [0, 0, 1, 1], [], []>} : vector<8x16xf32>, vector<16x512xf32>, vector<8x512xf32> -> vector<8x512xf32>
    %135 = arith.addf %134, %2 : vector<8x512xf32>
    %c0_50 = arith.constant 0 : index
    %c0_51 = arith.constant 0 : index
    %136 = vector.load %arg3[%c0_50, %c0_51] : memref<128x512xf32, #tpu.memory_space<vmem>>, vector<128x512xf32>
    %cst_52 = arith.constant dense<0.000000e+00> : vector<8x512xf32>
    %137 = tpu.matmul %130, %136, %cst_52 {dimension_numbers = #tpu.dot_dimension_numbers<[1], [0], [0], [1], [0, 0, 1, 1], [], []>} : vector<8x128xf32>, vector<128x512xf32>, vector<8x512xf32> -> vector<8x512xf32>
    %138 = arith.addf %137, %135 : vector<8x512xf32>
    %139 = vector.extract_strided_slice %138 {offsets = [0, 0], sizes = [8, 384], strides = [1, 1]} : vector<8x512xf32> to vector<8x384xf32>
    %140 = arith.negf %139 : vector<8x384xf32>
    %141 = math.exp %140 : vector<8x384xf32>
    %cst_53 = arith.constant 1.000000e+00 : f32
    %142 = vector.broadcast %cst_53 : f32 to vector<8x384xf32>
    %143 = arith.addf %142, %141 : vector<8x384xf32>
    %144 = arith.divf %142, %143 : vector<8x384xf32>
    %145 = vector.extract_strided_slice %138 {offsets = [0, 384], sizes = [8, 128], strides = [1, 1]} : vector<8x512xf32> to vector<8x128xf32>
    %146 = math.tanh %145 : vector<8x128xf32>
    %147 = vector.extract_strided_slice %144 {offsets = [0, 0], sizes = [8, 128], strides = [1, 1]} : vector<8x384xf32> to vector<8x128xf32>
    %148 = vector.extract_strided_slice %144 {offsets = [0, 128], sizes = [8, 128], strides = [1, 1]} : vector<8x384xf32> to vector<8x128xf32>
    %149 = vector.extract_strided_slice %144 {offsets = [0, 256], sizes = [8, 128], strides = [1, 1]} : vector<8x384xf32> to vector<8x128xf32>
    %150 = arith.mulf %148, %128 : vector<8x128xf32>
    %151 = arith.mulf %147, %146 : vector<8x128xf32>
    %152 = arith.addf %150, %151 : vector<8x128xf32>
    %153 = math.tanh %152 : vector<8x128xf32>
    %154 = arith.mulf %149, %153 : vector<8x128xf32>
    %c6 = arith.constant 6 : index
    %c0_54 = arith.constant 0 : index
    %c0_55 = arith.constant 0 : index
    %155 = vector.load %arg1[%c6, %c0_54, %c0_55] : memref<8x8x16xf32, #tpu.memory_space<vmem>>, vector<1x8x16xf32>
    %156 = vector.shape_cast %155 : vector<1x8x16xf32> to vector<8x16xf32>
    %c0_56 = arith.constant 0 : index
    %c0_57 = arith.constant 0 : index
    %157 = vector.load %arg2[%c0_56, %c0_57] : memref<16x512xf32, #tpu.memory_space<vmem>>, vector<16x512xf32>
    %cst_58 = arith.constant dense<0.000000e+00> : vector<8x512xf32>
    %158 = tpu.matmul %156, %157, %cst_58 {dimension_numbers = #tpu.dot_dimension_numbers<[1], [0], [0], [1], [0, 0, 1, 1], [], []>} : vector<8x16xf32>, vector<16x512xf32>, vector<8x512xf32> -> vector<8x512xf32>
    %159 = arith.addf %158, %2 : vector<8x512xf32>
    %c0_59 = arith.constant 0 : index
    %c0_60 = arith.constant 0 : index
    %160 = vector.load %arg3[%c0_59, %c0_60] : memref<128x512xf32, #tpu.memory_space<vmem>>, vector<128x512xf32>
    %cst_61 = arith.constant dense<0.000000e+00> : vector<8x512xf32>
    %161 = tpu.matmul %154, %160, %cst_61 {dimension_numbers = #tpu.dot_dimension_numbers<[1], [0], [0], [1], [0, 0, 1, 1], [], []>} : vector<8x128xf32>, vector<128x512xf32>, vector<8x512xf32> -> vector<8x512xf32>
    %162 = arith.addf %161, %159 : vector<8x512xf32>
    %163 = vector.extract_strided_slice %162 {offsets = [0, 0], sizes = [8, 384], strides = [1, 1]} : vector<8x512xf32> to vector<8x384xf32>
    %164 = arith.negf %163 : vector<8x384xf32>
    %165 = math.exp %164 : vector<8x384xf32>
    %cst_62 = arith.constant 1.000000e+00 : f32
    %166 = vector.broadcast %cst_62 : f32 to vector<8x384xf32>
    %167 = arith.addf %166, %165 : vector<8x384xf32>
    %168 = arith.divf %166, %167 : vector<8x384xf32>
    %169 = vector.extract_strided_slice %162 {offsets = [0, 384], sizes = [8, 128], strides = [1, 1]} : vector<8x512xf32> to vector<8x128xf32>
    %170 = math.tanh %169 : vector<8x128xf32>
    %171 = vector.extract_strided_slice %168 {offsets = [0, 0], sizes = [8, 128], strides = [1, 1]} : vector<8x384xf32> to vector<8x128xf32>
    %172 = vector.extract_strided_slice %168 {offsets = [0, 128], sizes = [8, 128], strides = [1, 1]} : vector<8x384xf32> to vector<8x128xf32>
    %173 = vector.extract_strided_slice %168 {offsets = [0, 256], sizes = [8, 128], strides = [1, 1]} : vector<8x384xf32> to vector<8x128xf32>
    %174 = arith.mulf %172, %152 : vector<8x128xf32>
    %175 = arith.mulf %171, %170 : vector<8x128xf32>
    %176 = arith.addf %174, %175 : vector<8x128xf32>
    %177 = math.tanh %176 : vector<8x128xf32>
    %178 = arith.mulf %173, %177 : vector<8x128xf32>
    %c7 = arith.constant 7 : index
    %c0_63 = arith.constant 0 : index
    %c0_64 = arith.constant 0 : index
    %179 = vector.load %arg1[%c7, %c0_63, %c0_64] : memref<8x8x16xf32, #tpu.memory_space<vmem>>, vector<1x8x16xf32>
    %180 = vector.shape_cast %179 : vector<1x8x16xf32> to vector<8x16xf32>
    %c0_65 = arith.constant 0 : index
    %c0_66 = arith.constant 0 : index
    %181 = vector.load %arg2[%c0_65, %c0_66] : memref<16x512xf32, #tpu.memory_space<vmem>>, vector<16x512xf32>
    %cst_67 = arith.constant dense<0.000000e+00> : vector<8x512xf32>
    %182 = tpu.matmul %180, %181, %cst_67 {dimension_numbers = #tpu.dot_dimension_numbers<[1], [0], [0], [1], [0, 0, 1, 1], [], []>} : vector<8x16xf32>, vector<16x512xf32>, vector<8x512xf32> -> vector<8x512xf32>
    %183 = arith.addf %182, %2 : vector<8x512xf32>
    %c0_68 = arith.constant 0 : index
    %c0_69 = arith.constant 0 : index
    %184 = vector.load %arg3[%c0_68, %c0_69] : memref<128x512xf32, #tpu.memory_space<vmem>>, vector<128x512xf32>
    %cst_70 = arith.constant dense<0.000000e+00> : vector<8x512xf32>
    %185 = tpu.matmul %178, %184, %cst_70 {dimension_numbers = #tpu.dot_dimension_numbers<[1], [0], [0], [1], [0, 0, 1, 1], [], []>} : vector<8x128xf32>, vector<128x512xf32>, vector<8x512xf32> -> vector<8x512xf32>
    %186 = arith.addf %185, %183 : vector<8x512xf32>
    %187 = vector.extract_strided_slice %186 {offsets = [0, 0], sizes = [8, 384], strides = [1, 1]} : vector<8x512xf32> to vector<8x384xf32>
    %188 = arith.negf %187 : vector<8x384xf32>
    %189 = math.exp %188 : vector<8x384xf32>
    %cst_71 = arith.constant 1.000000e+00 : f32
    %190 = vector.broadcast %cst_71 : f32 to vector<8x384xf32>
    %191 = arith.addf %190, %189 : vector<8x384xf32>
    %192 = arith.divf %190, %191 : vector<8x384xf32>
    %193 = vector.extract_strided_slice %186 {offsets = [0, 384], sizes = [8, 128], strides = [1, 1]} : vector<8x512xf32> to vector<8x128xf32>
    %194 = math.tanh %193 : vector<8x128xf32>
    %195 = vector.extract_strided_slice %192 {offsets = [0, 0], sizes = [8, 128], strides = [1, 1]} : vector<8x384xf32> to vector<8x128xf32>
    %196 = vector.extract_strided_slice %192 {offsets = [0, 128], sizes = [8, 128], strides = [1, 1]} : vector<8x384xf32> to vector<8x128xf32>
    %197 = vector.extract_strided_slice %192 {offsets = [0, 256], sizes = [8, 128], strides = [1, 1]} : vector<8x384xf32> to vector<8x128xf32>
    %198 = arith.mulf %196, %176 : vector<8x128xf32>
    %199 = arith.mulf %195, %194 : vector<8x128xf32>
    %200 = arith.addf %198, %199 : vector<8x128xf32>
    %201 = math.tanh %200 : vector<8x128xf32>
    %202 = arith.mulf %197, %201 : vector<8x128xf32>
    %c0_72 = arith.constant 0 : index
    %c0_73 = arith.constant 0 : index
    %203 = vector.load %arg3[%c0_72, %c0_73] : memref<128x512xf32, #tpu.memory_space<vmem>>, vector<128x512xf32>
    %cst_74 = arith.constant dense<0.000000e+00> : vector<8x512xf32>
    %204 = tpu.matmul %202, %203, %cst_74 {dimension_numbers = #tpu.dot_dimension_numbers<[1], [0], [0], [1], [0, 0, 1, 1], [], []>} : vector<8x128xf32>, vector<128x512xf32>, vector<8x512xf32> -> vector<8x512xf32>
    %205 = arith.addf %204, %2 : vector<8x512xf32>
    %206 = vector.extract_strided_slice %205 {offsets = [0, 0], sizes = [8, 384], strides = [1, 1]} : vector<8x512xf32> to vector<8x384xf32>
    %207 = arith.negf %206 : vector<8x384xf32>
    %208 = math.exp %207 : vector<8x384xf32>
    %cst_75 = arith.constant 1.000000e+00 : f32
    %209 = vector.broadcast %cst_75 : f32 to vector<8x384xf32>
    %210 = arith.addf %209, %208 : vector<8x384xf32>
    %211 = arith.divf %209, %210 : vector<8x384xf32>
    %212 = vector.extract_strided_slice %205 {offsets = [0, 384], sizes = [8, 128], strides = [1, 1]} : vector<8x512xf32> to vector<8x128xf32>
    %213 = math.tanh %212 : vector<8x128xf32>
    %214 = vector.extract_strided_slice %211 {offsets = [0, 0], sizes = [8, 128], strides = [1, 1]} : vector<8x384xf32> to vector<8x128xf32>
    %215 = vector.extract_strided_slice %211 {offsets = [0, 128], sizes = [8, 128], strides = [1, 1]} : vector<8x384xf32> to vector<8x128xf32>
    %216 = vector.extract_strided_slice %211 {offsets = [0, 256], sizes = [8, 128], strides = [1, 1]} : vector<8x384xf32> to vector<8x128xf32>
    %217 = arith.mulf %215, %200 : vector<8x128xf32>
    %218 = arith.mulf %214, %213 : vector<8x128xf32>
    %219 = arith.addf %217, %218 : vector<8x128xf32>
    %220 = math.tanh %219 : vector<8x128xf32>
    %221 = arith.mulf %216, %220 : vector<8x128xf32>
    %c0_76 = arith.constant 0 : index
    %c0_77 = arith.constant 0 : index
    %222 = vector.load %arg3[%c0_76, %c0_77] : memref<128x512xf32, #tpu.memory_space<vmem>>, vector<128x512xf32>
    %cst_78 = arith.constant dense<0.000000e+00> : vector<8x512xf32>
    %223 = tpu.matmul %221, %222, %cst_78 {dimension_numbers = #tpu.dot_dimension_numbers<[1], [0], [0], [1], [0, 0, 1, 1], [], []>} : vector<8x128xf32>, vector<128x512xf32>, vector<8x512xf32> -> vector<8x512xf32>
    %224 = arith.addf %223, %2 : vector<8x512xf32>
    %225 = vector.extract_strided_slice %224 {offsets = [0, 0], sizes = [8, 384], strides = [1, 1]} : vector<8x512xf32> to vector<8x384xf32>
    %226 = arith.negf %225 : vector<8x384xf32>
    %227 = math.exp %226 : vector<8x384xf32>
    %cst_79 = arith.constant 1.000000e+00 : f32
    %228 = vector.broadcast %cst_79 : f32 to vector<8x384xf32>
    %229 = arith.addf %228, %227 : vector<8x384xf32>
    %230 = arith.divf %228, %229 : vector<8x384xf32>
    %231 = vector.extract_strided_slice %224 {offsets = [0, 384], sizes = [8, 128], strides = [1, 1]} : vector<8x512xf32> to vector<8x128xf32>
    %232 = math.tanh %231 : vector<8x128xf32>
    %233 = vector.extract_strided_slice %230 {offsets = [0, 0], sizes = [8, 128], strides = [1, 1]} : vector<8x384xf32> to vector<8x128xf32>
    %234 = vector.extract_strided_slice %230 {offsets = [0, 128], sizes = [8, 128], strides = [1, 1]} : vector<8x384xf32> to vector<8x128xf32>
    %235 = vector.extract_strided_slice %230 {offsets = [0, 256], sizes = [8, 128], strides = [1, 1]} : vector<8x384xf32> to vector<8x128xf32>
    %236 = arith.mulf %234, %219 : vector<8x128xf32>
    %237 = arith.mulf %233, %232 : vector<8x128xf32>
    %238 = arith.addf %236, %237 : vector<8x128xf32>
    %239 = math.tanh %238 : vector<8x128xf32>
    %240 = arith.mulf %235, %239 : vector<8x128xf32>
    %c0_80 = arith.constant 0 : index
    %c0_81 = arith.constant 0 : index
    %241 = vector.load %arg5[%c0_80, %c0_81] : memref<128x8xf32, #tpu.memory_space<vmem>>, vector<128x8xf32>
    %cst_82 = arith.constant dense<0.000000e+00> : vector<8x8xf32>
    %242 = tpu.matmul %240, %241, %cst_82 {dimension_numbers = #tpu.dot_dimension_numbers<[1], [0], [0], [1], [0, 0, 1, 1], [], []>} : vector<8x128xf32>, vector<128x8xf32>, vector<8x8xf32> -> vector<8x8xf32>
    %c0_83 = arith.constant 0 : index
    %c0_84 = arith.constant 0 : index
    %243 = vector.load %arg6[%c0_83, %c0_84] : memref<1x8xf32, #tpu.memory_space<vmem>>, vector<1x8xf32>
    %244 = vector.broadcast %243 : vector<1x8xf32> to vector<8x8xf32>
    %245 = arith.addf %242, %244 : vector<8x8xf32>
    %cst_85 = arith.constant dense<0xFF800000> : vector<8xf32>
    %246 = vector.multi_reduction <maximumf>, %245, %cst_85 [1] : vector<8x8xf32> to vector<8xf32>
    %247 = vector.shape_cast %246 : vector<8xf32> to vector<8x1xf32>
    %248 = vector.broadcast %247 : vector<8x1xf32> to vector<8x8xf32>
    %249 = arith.subf %245, %248 : vector<8x8xf32>
    %250 = math.exp %249 : vector<8x8xf32>
    %cst_86 = arith.constant dense<0.000000e+00> : vector<8xf32>
    %251 = vector.multi_reduction <add>, %250, %cst_86 [1] : vector<8x8xf32> to vector<8xf32>
    %252 = vector.shape_cast %251 : vector<8xf32> to vector<8x1xf32>
    %253 = math.log %252 : vector<8x1xf32>
    %254 = vector.broadcast %253 : vector<8x1xf32> to vector<8x8xf32>
    %255 = arith.subf %249, %254 : vector<8x8xf32>
    %c0_87 = arith.constant 0 : index
    %c0_88 = arith.constant 0 : index
    %256 = vector.load %arg7[%c0_87, %c0_88] : memref<8x8xf32, #tpu.memory_space<vmem>>, vector<8x8xf32>
    tpu.vector_store %arg7[%c0_87, %c0_88], %255 {strides = array<i32>} : memref<8x8xf32, #tpu.memory_space<vmem>>, vector<8x8xf32>,
    return
  }
  func.func @transform_0(%arg0: i32) -> (i32, i32, i32) {
    %c0_i32 = arith.constant 0 : i32
    %c0_i32_0 = arith.constant 0 : i32
    %c0_i32_1 = arith.constant 0 : i32
    return %c0_i32, %arg0, %c0_i32_0 : i32, i32, i32
  }
  func.func @transform_1(%arg0: i32) -> (i32, i32) {
    %c0_i32 = arith.constant 0 : i32
    %c0_i32_0 = arith.constant 0 : i32
    %c0_i32_1 = arith.constant 0 : i32
    return %c0_i32, %c0_i32_0 : i32, i32
  }
  func.func @transform_2(%arg0: i32) -> (i32, i32) {
    %c0_i32 = arith.constant 0 : i32
    %c0_i32_0 = arith.constant 0 : i32
    %c0_i32_1 = arith.constant 0 : i32
    return %c0_i32, %c0_i32_0 : i32, i32
  }
  func.func @transform_3(%arg0: i32) -> (i32, i32) {
    %c0_i32 = arith.constant 0 : i32
    %c0_i32_0 = arith.constant 0 : i32
    %c0_i32_1 = arith.constant 0 : i32
    return %c0_i32, %c0_i32_0 : i32, i32
  }
  func.func @transform_4(%arg0: i32) -> (i32, i32) {
    %c0_i32 = arith.constant 0 : i32
    %c0_i32_0 = arith.constant 0 : i32
    %c0_i32_1 = arith.constant 0 : i32
    return %c0_i32, %c0_i32_0 : i32, i32
  }
  func.func @transform_5(%arg0: i32) -> (i32, i32) {
    %c0_i32 = arith.constant 0 : i32
    %c0_i32_0 = arith.constant 0 : i32
    %c0_i32_1 = arith.constant 0 : i32
    return %c0_i32, %c0_i32_0 : i32, i32
  }
  func.func @transform_6(%arg0: i32) -> (i32, i32) {
    %c0_i32 = arith.constant 0 : i32
    %c0_i32_0 = arith.constant 0 : i32
    return %arg0, %c0_i32 : i32, i32
  }
}

</mosaic_0001>

<bundles_post_ra>
// kernel: lstm_fixed_len_forward.1
= control target key start
LH: loop header
LB: loop body
LE: loop exit
PB: predicated region body
PF: predicated region fallthrough
CT: control target
= control target key end

     0   :  { %v3925_v3 = vmov 0.0   ;;  %vm56_vm0 = vcmask 130048   ;;  %vm3927_vm3 = vmmov 0   ;;  %vm2912_vm4 = vcmask 64512   ;;  %s4796_s1 = inlined_call_operand.vmem [shape: f32[16,512], index: 1, kind: input, shape index: {}]   ;;  %s4797_s0 = inlined_call_operand.vmem [shape: f32[8,8,16], index: 0, kind: input, shape index: {}]   ;;  %s4798_s2 = inlined_call_operand.vmem [shape: f32[128,512], index: 2, kind: input, shape index: {}]   ;;  %s4799_s3 = inlined_call_operand.vmem [shape: f32[1,512], index: 3, kind: input, shape index: {}]   ;;  %s4800_s4 = inlined_call_operand.vmem [shape: f32[128,8], index: 4, kind: input, shape index: {}]   ;;  %s4801_s5 = inlined_call_operand.vmem [shape: f32[1,8], index: 5, kind: input, shape index: {}]   ;;  %s4802_s6 = inlined_call_operand.vmem [shape: f32[8,8], index: 6, kind: output, shape index: {}]  }
   0x1   :  { %v49_v0 = vld [vmem:[%s4796_s1 + $0x8] sm:$0xff]  ;;  %v48_v2 = vld [vmem:[%s4796_s1] sm:$0xff]  ;;  %124 = vmatprep.mubr.f32.mxu1 %v3925_v3  ;;  %504 = vmatprep.mubr.f32.mxu0 %v3925_v3  ;;  %v51_v6 = vld [vmem:[%s4796_s1 + $0x18] sm:$0xff] }
   0x2   :  { %v53_v1 = vld [vmem:[%s4796_s1 + $0x28] sm:$0xff]  ;;  %v52_v5 = vld [vmem:[%s4796_s1 + $0x20] sm:$0xff]  ;;  %v55_v8 = vld [vmem:[%s4796_s1 + $0x38] sm:$0xff] }
   0x3   :  { %v3974_v4 = vpack.c.bf16 %v53_v1, %v49_v0  ;;  %v3982_v7 = vpack.c.bf16 %v52_v5, %v48_v2  ;;  %v50_v9 = vld [vmem:[%s4796_s1 + $0x10] sm:$0xff]  ;;  %v3994_v11 = vpack.c.bf16 %v55_v8, %v51_v6  ;;  %v47_v12 = vld [vmem:[%s4797_s0] sm:$0xff]  ;;  %v2935_v14 = vld [vmem:[%s4797_s0 + $0x8] sm:$0xff] }
   0x4   :  { %v54_v10 = vld [vmem:[%s4796_s1 + $0x30] sm:$0xff]  ;;  %v377_v15 = vld [vmem:[%s4798_s2 + $0x8] sm:$0xff]  ;;  %v379_v17 = vld [vmem:[%s4798_s2 + $0x18] sm:$0xff] }
   0x5   :  { %3039 = vmatprep.subr.bf16.mxu1 %v3974_v4  ;;  %v4000_v13 = vpack.c.bf16 %v54_v10, %v50_v9  ;;  %v381_v16 = vld [vmem:[%s4798_s2 + $0x28] sm:$0xff]  ;;  %v383_v19 = vld [vmem:[%s4798_s2 + $0x38] sm:$0xff]  ;;  %v376_v20 = vld [vmem:[%s4798_s2] sm:$0xff] }
   0x6   :  { %3041 = vmatpush1.bf16.msra.mxu1 %v3982_v7  ;;  %v4026_v18 = vpack.c.bf16 %v381_v16, %v377_v15  ;;  %v380_v21 = vld [vmem:[%s4798_s2 + $0x20] sm:$0xff]  ;;  %v4037_v22 = vpack.c.bf16 %v383_v19, %v379_v17  ;;  %v378_v24 = vld [vmem:[%s4798_s2 + $0x10] sm:$0xff]  ;;  %v385_v27 = vld [vmem:[%s4798_s2 + $0x48] sm:$0xff] }
   0x7   :  { %3043 = vmatprep.subr.bf16.mxu1 %v3994_v11  ;;  %v4039_v23 = vpack.c.bf16 %v380_v21, %v376_v20  ;;  %v382_v25 = vld [vmem:[%s4798_s2 + $0x30] sm:$0xff]  ;;  %v389_v28 = vld [vmem:[%s4798_s2 + $0x68] sm:$0xff]  ;;  %v387_v29 = vld [vmem:[%s4798_s2 + $0x58] sm:$0xff] }
   0x8   :  { %3055 = vmatprep.subr.bf16.mxu0 %v4026_v18  ;;  %v4048_v26 = vpack.c.bf16 %v382_v25, %v378_v24  ;;  %v4063_v30 = vpack.c.bf16 %v389_v28, %v385_v27  ;;  %v391_v31 = vld [vmem:[%s4798_s2 + $0x78] sm:$0xff]  ;;  %v384_v32 = vld [vmem:[%s4798_s2 + $0x40] sm:$0xff]  ;;  %v386_v36 = vld [vmem:[%s4798_s2 + $0x50] sm:$0xff] }
   0x9   :  { %2930 = vmatmul.mubr.msk.f32.vlgmr.msra.gmra.mrb[0].mxu1 %vm56_vm0, %v47_v12  ;;  %3057 = vmatpush1.bf16.msra.mxu0 %v4039_v23  ;;  %v388_v33 = vld [vmem:[%s4798_s2 + $0x60] sm:$0xff]  ;;  %v4074_v34 = vpack.c.bf16 %v391_v31, %v387_v29  ;;  %v390_v37 = vld [vmem:[%s4798_s2 + $0x70] sm:$0xff]  ;;  %v393_v39 = vld [vmem:[%s4798_s2 + $0x88] sm:$0xff] }
   0xa   :  { %3045 = vmatpush1.bf16.msra.mxu1 %v4000_v13  ;;  %195 = vmatprep.mubr.f32.mxu1 %v3925_v3  ;;  %v4076_v35 = vpack.c.bf16 %v388_v33, %v384_v32  ;;  %v4086_v38 = vpack.c.bf16 %v390_v37, %v386_v36  ;;  %v397_v40 = vld [vmem:[%s4798_s2 + $0xa8] sm:$0xff]  ;;  %v395_v41 = vld [vmem:[%s4798_s2 + $0x98] sm:$0xff]  ;;  %v392_v44 = vld [vmem:[%s4798_s2 + $0x80] sm:$0xff] }
   0xb   :  { %3047 = vmatprep.subr.bf16.mxu1 %v3974_v4  ;;  %3059 = vmatprep.subr.bf16.mxu0 %v4063_v30  ;;  %v4100_v42 = vpack.c.bf16 %v397_v40, %v393_v39  ;;  %v399_v43 = vld [vmem:[%s4798_s2 + $0xb8] sm:$0xff]  ;;  %v396_v45 = vld [vmem:[%s4798_s2 + $0xa0] sm:$0xff]  ;;  %v394_v48 = vld [vmem:[%s4798_s2 + $0x90] sm:$0xff] }
   0xc   :  { %v4111_v46 = vpack.c.bf16 %v399_v43, %v395_v41  ;;  %v4113_v47 = vpack.c.bf16 %v396_v45, %v392_v44  ;;  %v398_v49 = vld [vmem:[%s4798_s2 + $0xb0] sm:$0xff]  ;;  %v401_v51 = vld [vmem:[%s4798_s2 + $0xc8] sm:$0xff]  ;;  %v403_v53 = vld [vmem:[%s4798_s2 + $0xd8] sm:$0xff] }
   0xd   :  { %2931 = vmatmul.mubr.msk.f32.vlgmr.msra.gmra.mrb[2].mxu1 %vm56_vm0, %v47_v12  ;;  %3061 = vmatpush1.bf16.msra.mxu0 %v4076_v35  ;;  %v4122_v50 = vpack.c.bf16 %v398_v49, %v394_v48  ;;  %v405_v52 = vld [vmem:[%s4798_s2 + $0xe8] sm:$0xff]  ;;  %v407_v55 = vld [vmem:[%s4798_s2 + $0xf8] sm:$0xff]  ;;  %v400_v56 = vld [vmem:[%s4798_s2 + $0xc0] sm:$0xff] }
   0xe   :  { %3049 = vmatpush1.bf16.msra.mxu1 %v3982_v7  ;;  %298 = vmatprep.mubr.f32.mxu1 %v3925_v3  ;;  %v4136_v54 = vpack.c.bf16 %v405_v52, %v401_v51  ;;  %v404_v57 = vld [vmem:[%s4798_s2 + $0xe0] sm:$0xff]  ;;  %v4147_v58 = vpack.c.bf16 %v407_v55, %v403_v53  ;;  %v402_v60 = vld [vmem:[%s4798_s2 + $0xd0] sm:$0xff]  ;;  %v409_v63 = vld [vmem:[%s4798_s2 + $0x108] sm:$0xff] }
   0xf   :  { %3051 = vmatprep.subr.bf16.mxu1 %v3994_v11  ;;  %3063 = vmatprep.subr.bf16.mxu0 %v4100_v42  ;;  %v4149_v59 = vpack.c.bf16 %v404_v57, %v400_v56  ;;  %v406_v61 = vld [vmem:[%s4798_s2 + $0xf0] sm:$0xff]  ;;  %v413_v0 = vld [vmem:[%s4798_s2 + $0x128] sm:$0xff]  ;;  %v411_v1 = vld [vmem:[%s4798_s2 + $0x118] sm:$0xff] }
  0x10   :  { %v4158_v62 = vpack.c.bf16 %v406_v61, %v402_v60  ;;  %v4172_v2 = vpack.c.bf16 %v413_v0, %v409_v63  ;;  %v415_v5 = vld [vmem:[%s4798_s2 + $0x138] sm:$0xff]  ;;  %v408_v6 = vld [vmem:[%s4798_s2 + $0x100] sm:$0xff]  ;;  %v410_v12 = vld [vmem:[%s4798_s2 + $0x110] sm:$0xff] }
  0x11   :  { %2936 = vmatmul.mubr.msk.f32.vlgmr.msra.gmra.mrb[4].mxu1 %vm56_vm0, %v2935_v14  ;;  %3065 = vmatpush1.bf16.msra.mxu0 %v4113_v47  ;;  %v412_v8 = vld [vmem:[%s4798_s2 + $0x120] sm:$0xff]  ;;  %v4183_v9 = vpack.c.bf16 %v415_v5, %v411_v1  ;;  %v417_v15 = vld [vmem:[%s4798_s2 + $0x148] sm:$0xff]  ;;  %v419_v19 = vld [vmem:[%s4798_s2 + $0x158] sm:$0xff] }
  0x12   :  { %3053 = vmatpush1.bf16.msra.mxu1 %v4000_v13  ;;  %369 = vmatprep.mubr.f32.mxu1 %v3925_v3  ;;  %v4185_v10 = vpack.c.bf16 %v412_v8, %v408_v6  ;;  %v421_v17 = vld [vmem:[%s4798_s2 + $0x168] sm:$0xff]  ;;  %v423_v20 = vld [vmem:[%s4798_s2 + $0x178] sm:$0xff]  ;;  %v416_v25 = vld [vmem:[%s4798_s2 + $0x140] sm:$0xff]  ;;  %v25_v8 = vlaneseq }
  0x13   :  { %3087 = vmatprep.subr.bf16.mxu1 %v4037_v22  ;;  %3067 = vmatprep.subr.bf16.mxu0 %v4136_v54  ;;  %v4209_v21 = vpack.c.bf16 %v421_v17, %v417_v15  ;;  %v4211_v24 = vpack.c.bf16 %v423_v20, %v419_v19  ;;  %v420_v27 = vld [vmem:[%s4798_s2 + $0x160] sm:$0xff]  ;;  %v418_v28 = vld [vmem:[%s4798_s2 + $0x150] sm:$0xff]  ;;  %v425_v32 = vld [vmem:[%s4798_s2 + $0x188] sm:$0xff] }
  0x14   :  { %v4224_v29 = vpack.c.bf16 %v420_v27, %v416_v25  ;;  %v422_v31 = vld [vmem:[%s4798_s2 + $0x170] sm:$0xff]  ;;  %v429_v33 = vld [vmem:[%s4798_s2 + $0x1a8] sm:$0xff]  ;;  %v427_v39 = vld [vmem:[%s4798_s2 + $0x198] sm:$0xff] }
  0x15   :  { %2937 = vmatmul.mubr.msk.f32.vlgmr.msra.gmra.mrb[6].mxu1 %vm56_vm0, %v2935_v14  ;;  %3069 = vmatpush1.bf16.msra.mxu0 %v4149_v59  ;;  %v414_v14 = vld [vmem:[%s4798_s2 + $0x130] sm:$0xff]  ;;  %v4237_v36 = vpack.c.bf16 %v422_v31, %v418_v28  ;;  %v4239_v37 = vpack.c.bf16 %v429_v33, %v425_v32  ;;  %v431_v40 = vld [vmem:[%s4798_s2 + $0x1b8] sm:$0xff]  ;;  %v424_v41 = vld [vmem:[%s4798_s2 + $0x180] sm:$0xff] }
  0x16   :  { %3089 = vmatpush1.bf16.msra.mxu1 %v4048_v26  ;;  %575 = vmatprep.mubr.f32.mxu1 %v3925_v3  ;;  %v4197_v16 = vpack.c.bf16 %v414_v14, %v410_v12  ;;  %v4250_v43 = vpack.c.bf16 %v431_v40, %v427_v39  ;;  %v428_v44 = vld [vmem:[%s4798_s2 + $0x1a0] sm:$0xff]  ;;  %v426_v45 = vld [vmem:[%s4798_s2 + $0x190] sm:$0xff]  ;;  %v433_v49 = vld [vmem:[%s4798_s2 + $0x1c8] sm:$0xff]  ;;  %v26_v12 = vshrl.u32 %v25_v8, 7 }
  0x17   :  { %3091 = vmatprep.subr.bf16.mxu1 %v4074_v34  ;;  %3071 = vmatprep.subr.bf16.mxu0 %v4172_v2  ;;  %v430_v48 = vld [vmem:[%s4798_s2 + $0x1b0] sm:$0xff]  ;;  %v437_v51 = vld [vmem:[%s4798_s2 + $0x1e8] sm:$0xff]  ;;  %v435_v52 = vld [vmem:[%s4798_s2 + $0x1d8] sm:$0xff]  ;;  %v4272_v53 = vpack.c.bf16 %v428_v44, %v424_v41 }
  0x18   :  { %v4274_v55 = vpack.c.bf16 %v430_v48, %v426_v45  ;;  %v439_v56 = vld [vmem:[%s4798_s2 + $0x1f8] sm:$0xff]  ;;  %v432_v57 = vld [vmem:[%s4798_s2 + $0x1c0] sm:$0xff]  ;;  %v4284_v60 = vpack.c.bf16 %v437_v51, %v433_v49  ;;  %v434_v0 = vld [vmem:[%s4798_s2 + $0x1d0] sm:$0xff]  ;;  %v27_v14 = vsub.s32 0, %v26_v12  ;;  %v31_v17 = vsub.s32 1, %v26_v12 }
  0x19   :  { %3073 = vmatpush1.bf16.msra.mxu0 %v4185_v10  ;;  %v4286_v61 = vpack.c.bf16 %v439_v56, %v435_v52  ;;  %v436_v63 = vld [vmem:[%s4798_s2 + $0x1e0] sm:$0xff]  ;;  %v438_v1 = vld [vmem:[%s4798_s2 + $0x1f0] sm:$0xff]  ;;  %v35_v25 = vsub.s32 2, %v26_v12  ;;  %v39_v44 = vsub.s32 3, %v26_v12 }
  0x1a   :  { %3093 = vmatpush1.bf16.msra.mxu1 %v4086_v38  ;;  %3075 = vmatprep.subr.bf16.mxu0 %v4209_v21  ;;  %v4299_v5 = vpack.c.bf16 %v436_v63, %v432_v57  ;;  %v4301_v6 = vpack.c.bf16 %v438_v1, %v434_v0  ;;  %v23_v15 = vld [vmem:[%s4799_s3] sm:$0xf] }
  0x1b   :  { %3095 = vmatprep.subr.bf16.mxu1 %v4111_v46  ;;  %v4312_v19 = vrot.slane %v23_v15, %v27_v14  ;;  %v4314_v20 = vrot.slane %v23_v15, %v31_v17  ;;  %v4318_v39 = vrot.slane %v23_v15, %v35_v25  ;;  %v4321_v49 = vrot.slane %v23_v15, %v39_v44 }
  0x1c   :  { %v4324_v14 = vand.u32 127, %v25_v8 }
  0x1d   :  { %3077 = vmatpush1.bf16.msra.mxu0 %v4224_v29 }
  0x1e   :  { %3097 = vmatpush1.bf16.msra.mxu1 %v4122_v50  ;;  %3079 = vmatprep.subr.bf16.mxu0 %v4239_v37  ;;  %vm226_vm1 = vcmp.lt.s32.totalorder %v4324_v14, 32  ;;  %vm606_vm2 = vcmp.lt.s32.totalorder %v4324_v14, 64 }
  0x1f   :  { %3099 = vmatprep.subr.bf16.mxu1 %v4147_v58 }
  0x21   :  { %3081 = vmatpush1.bf16.msra.mxu0 %v4272_v53 }
  0x22   :  { %3101 = vmatpush1.bf16.msra.mxu1 %v4158_v62  ;;  %3083 = vmatprep.subr.bf16.mxu0 %v4284_v60 }
  0x23   :  { %3103 = vmatprep.subr.bf16.mxu1 %v4183_v9 }
  0x25   :  { %3085 = vmatpush1.bf16.msra.mxu0 %v4299_v5 }
  0x26   :  { %3105 = vmatpush1.bf16.msra.mxu1 %v4197_v16  ;;  %3127 = vmatprep.subr.bf16.mxu0 %v4026_v18 }
  0x27   :  { %3107 = vmatprep.subr.bf16.mxu1 %v4211_v24 }
  0x2a   :  { %3109 = vmatpush1.bf16.msra.mxu1 %v4237_v36 }
  0x2b   :  { %3111 = vmatprep.subr.bf16.mxu1 %v4250_v43 }
  0x2e   :  { %3113 = vmatpush1.bf16.msra.mxu1 %v4274_v55 }
  0x2f   :  { %3115 = vmatprep.subr.bf16.mxu1 %v4286_v61 }
  0x32   :  { %3117 = vmatpush1.bf16.msra.mxu1 %v4301_v6 }
  0x33   :  { %3119 = vmatprep.subr.bf16.mxu1 %v3974_v4 }
  0xdc   :  { %v126_v27 = vpop.f32.mrb[0].mxu1 }
  0xdd   :  { %v127_v28 = vadd.f32 %v126_v27, %v4312_v19  ;;  %v128_v31 = vpop.f32.mrb[1].mxu1 }
  0xde   :  { %v129_v32 = vadd.f32 %v128_v31, %v4314_v20 }
  0xdf   :  { %v2932_v33 = vmul.f32 -1.442695, %v127_v28 }
  0xe0   :  { %v2933_v40 = vmul.f32 -1.442695, %v129_v32  ;;  %v197_v41 = vpop.f32.mrb[2].mxu1 }
  0xe1   :  { %3761 = vpow2.f32 %v2932_v33  ;;  %v199_v45 = vpop.f32.mrb[3].mxu1  ;;  %v198_v48 = vadd.f32 %v197_v41, %v4318_v39 }
  0xe2   :  { %3763 = vpow2.f32 %v2933_v40  ;;  %v200_v52 = vadd.f32 %v199_v45, %v4321_v49 }
  0xe3   :  { %v2934_v51 = vmul.f32 -1.442695, %v198_v48  ;;  %v2943_v48 = vld [vmem:[%s4797_s0 + $0x10] sm:$0xff] }
  0xe4   :  { %v300_v8 = vpop.f32.mrb[4].mxu1 }
  0xe5   :  { %3765 = vpow2.f32 %v2934_v51  ;;  %v302_v45 = vpop.f32.mrb[5].mxu1  ;;  %v301_v51 = vadd.f32 %v300_v8, %v4312_v19 }
  0xe6   :  { %3767 = vtanh.f32 %v200_v52  ;;  %v303_v52 = vadd.f32 %v302_v45, %v4314_v20 }
  0xeb   :  { %v3762_v56 = vpop.eup %3761 }
  0xec   :  { %v3764_v57 = vpop.eup %3763  ;;  %v211_v63 = vadd.f32 1.0, %v3762_v56 }
  0xed   :  { %v212_v0 = vadd.f32 1.0, %v3764_v57 }
  0xee   :  { %3769 = vrcp.f32 %v211_v63 }
  0xef   :  { %3771 = vrcp.f32 %v212_v0  ;;  %v3766_v1 = vpop.eup %3765 }
  0xf0   :  { %v3768_v12 = vpop.eup %3767  ;;  %v213_v25 = vadd.f32 1.0, %v3766_v1 }
  0xf2   :  { %3773 = vrcp.f32 %v213_v25 }
  0xf8   :  { %v3770_v17 = vpop.eup %3769 }
  0xf9   :  { %v3772_v27 = vpop.eup %3771  ;;  %v222_v15 = vmul.f32 %v3770_v17, %v3768_v12 }
  0xfa   :  { %v221_v28 = vmul.f32 0.0, %v3772_v27 }
  0xfc   :  { %v223_v31 = vadd.f32 %v222_v15, %v221_v28  ;;  %v3774_v33 = vpop.eup %3773 }
  0xfe   :  { %3775 = vtanh.f32 %v223_v31  ;;  %v4327_v32 = vsel %vm226_vm1, %v223_v31, 0.0 }
 0x108   :  { %v3776_v40 = vpop.eup %3775 }
 0x109   :  { %v225_v41 = vmul.f32 %v3776_v40, %v3774_v33 }
 0x10b   :  { %2938 = vmatmul.mubr.msk.f32.vlgmr.msra.gmra.mrb[0].mxu0 %vm226_vm1, %v225_v41  ;;  %2939 = vmatmul.mubr.msk.f32.vlgmr.msra.gmra.mrb[6].mxu1 %vm226_vm1, %v225_v41  ;;  %v4329_v44 = vsel %vm226_vm1, %v225_v41, 0.0 }
 0x10c   :  { %3121 = vmatpush1.bf16.msra.mxu1 %v3982_v7  ;;  %678 = vmatprep.mubr.f32.mxu1 %v3925_v3 }
 0x10d   :  { %3123 = vmatprep.subr.bf16.mxu1 %v3994_v11  ;;  %3129 = vmatpush1.bf16.msra.mxu0 %v4039_v23 }
 0x10e   :  { %3131 = vmatprep.subr.bf16.mxu0 %v4063_v30  ;;  %820 = vmatprep.mubr.f32.mxu0 %v3925_v3 }
 0x10f   :  { %2944 = vmatmul.mubr.msk.f32.vlgmr.msra.gmra.mrb[8].mxu1 %vm56_vm0, %v2943_v48 }
 0x110   :  { %3125 = vmatpush1.bf16.msra.mxu1 %v4000_v13  ;;  %749 = vmatprep.mubr.f32.mxu1 %v3925_v3 }
 0x111   :  { %3133 = vmatpush1.bf16.msra.mxu0 %v4076_v35  ;;  %3159 = vmatprep.subr.bf16.mxu1 %v4037_v22 }
 0x112   :  { %3135 = vmatprep.subr.bf16.mxu0 %v4100_v42 }
 0x113   :  { %2945 = vmatmul.mubr.msk.f32.vlgmr.msra.gmra.mrb[10].mxu1 %vm56_vm0, %v2943_v48 }
 0x114   :  { %3161 = vmatpush1.bf16.msra.mxu1 %v4048_v26  ;;  %891 = vmatprep.mubr.f32.mxu1 %v3925_v3 }
 0x115   :  { %3137 = vmatpush1.bf16.msra.mxu0 %v4113_v47  ;;  %3163 = vmatprep.subr.bf16.mxu1 %v4074_v34 }
 0x116   :  { %3139 = vmatprep.subr.bf16.mxu0 %v4136_v54 }
 0x118   :  { %3165 = vmatpush1.bf16.msra.mxu1 %v4086_v38 }
 0x119   :  { %3141 = vmatpush1.bf16.msra.mxu0 %v4149_v59  ;;  %3167 = vmatprep.subr.bf16.mxu1 %v4111_v46 }
 0x11a   :  { %3143 = vmatprep.subr.bf16.mxu0 %v4172_v2 }
 0x11c   :  { %3169 = vmatpush1.bf16.msra.mxu1 %v4122_v50 }
 0x11d   :  { %3145 = vmatpush1.bf16.msra.mxu0 %v4185_v10  ;;  %3171 = vmatprep.subr.bf16.mxu1 %v4147_v58 }
 0x11e   :  { %3147 = vmatprep.subr.bf16.mxu0 %v4209_v21 }
 0x120   :  { %3173 = vmatpush1.bf16.msra.mxu1 %v4158_v62 }
 0x121   :  { %3149 = vmatpush1.bf16.msra.mxu0 %v4224_v29  ;;  %3175 = vmatprep.subr.bf16.mxu1 %v4183_v9 }
 0x122   :  { %3151 = vmatprep.subr.bf16.mxu0 %v4239_v37 }
 0x124   :  { %3177 = vmatpush1.bf16.msra.mxu1 %v4197_v16 }
 0x125   :  { %3153 = vmatpush1.bf16.msra.mxu0 %v4272_v53  ;;  %3179 = vmatprep.subr.bf16.mxu1 %v4211_v24 }
 0x126   :  { %3155 = vmatprep.subr.bf16.mxu0 %v4284_v60 }
 0x128   :  { %3181 = vmatpush1.bf16.msra.mxu1 %v4237_v36 }
 0x129   :  { %3157 = vmatpush1.bf16.msra.mxu0 %v4299_v5  ;;  %3183 = vmatprep.subr.bf16.mxu1 %v4250_v43 }
 0x12a   :  { %3199 = vmatprep.subr.bf16.mxu0 %v4026_v18 }
 0x12c   :  { %3185 = vmatpush1.bf16.msra.mxu1 %v4274_v55 }
 0x12d   :  { %3187 = vmatprep.subr.bf16.mxu1 %v4286_v61 }
 0x130   :  { %3189 = vmatpush1.bf16.msra.mxu1 %v4301_v6 }
 0x131   :  { %3191 = vmatprep.subr.bf16.mxu1 %v3974_v4 }
 0x1de   :  { %v506_v56 = vpop.f32.mrb[0].mxu0  ;;  %v577_v57 = vpop.f32.mrb[6].mxu1 }
 0x1df   :  { %v507_v63 = vadd.f32 %v506_v56, %v301_v51  ;;  %v508_v0 = vpop.f32.mrb[1].mxu0  ;;  %v579_v1 = vpop.f32.mrb[7].mxu1  ;;  %v3706_v27 = vadd.f32 %v577_v57, %v4318_v39 }
 0x1e0   :  { %v509_v12 = vadd.f32 %v508_v0, %v303_v52  ;;  %v3707_v15 = vadd.f32 %v579_v1, %v4321_v49 }
 0x1e1   :  { %v2940_v17 = vmul.f32 -1.442695, %v507_v63  ;;  %v2942_v28 = vmul.f32 -1.442695, %v3706_v27 }
 0x1e2   :  { %v2941_v25 = vmul.f32 -1.442695, %v509_v12  ;;  %v680_v14 = vpop.f32.mrb[8].mxu1 }
 0x1e3   :  { %3777 = vpow2.f32 %v2940_v17  ;;  %v681_v27 = vadd.f32 %v680_v14, %v4312_v19 }
 0x1e4   :  { %3779 = vpow2.f32 %v2941_v25 }
 0x1e5   :  { %3781 = vtanh.f32 %v3707_v15 }
 0x1e6   :  { %3783 = vpow2.f32 %v2942_v28 }
 0x1ed   :  { %v3778_v31 = vpop.eup %3777 }
 0x1ee   :  { %v591_v33 = vadd.f32 1.0, %v3778_v31  ;;  %v3780_v40 = vpop.eup %3779 }
 0x1ef   :  { %v592_v41 = vadd.f32 1.0, %v3780_v40  ;;  %v3782_v8 = vpop.eup %3781 }
 0x1f0   :  { %3785 = vrcp.f32 %v591_v33  ;;  %v3784_v45 = vpop.eup %3783 }
 0x1f1   :  { %3787 = vrcp.f32 %v592_v41  ;;  %v593_v56 = vadd.f32 1.0, %v3784_v45 }
 0x1f3   :  { %3789 = vrcp.f32 %v593_v56 }
 0x1fa   :  { %v3786_v48 = vpop.eup %3785 }
 0x1fb   :  { %v602_v51 = vmul.f32 %v3786_v48, %v3782_v8  ;;  %v3788_v52 = vpop.eup %3787 }
 0x1fc   :  { %v601_v63 = vmul.f32 %v3788_v52, %v4327_v32 }
 0x1fd   :  { %v3790_v1 = vpop.eup %3789 }
 0x1fe   :  { %v603_v57 = vadd.f32 %v602_v51, %v601_v63 }
 0x200   :  { %3791 = vtanh.f32 %v603_v57  ;;  %v4383_v0 = vsel %vm606_vm2, %v603_v57, %v4327_v32  ;;  %v682_v32 = vpop.f32.mrb[9].mxu1 }
 0x201   :  { %v683_v15 = vadd.f32 %v682_v32, %v4314_v20 }
 0x20a   :  { %v3792_v12 = vpop.eup %3791 }
 0x20b   :  { %v605_v17 = vmul.f32 %v3792_v12, %v3790_v1 }
 0x20d   :  { %v608_v25 = vsel %vm606_vm2, %v605_v17, %v4329_v44  ;;  %v2949_v44 = vld [vmem:[%s4797_s0 + $0x18] sm:$0xff] }
 0x20e   :  { %821 = vmatmul.mubr.f32.vlgmr.msra.gmra.mrb[2].mxu0 %v608_v25  ;;  %892 = vmatmul.mubr.f32.vlgmr.msra.gmra.mrb[10].mxu1 %v608_v25 }
 0x20f   :  { %3193 = vmatpush1.bf16.msra.mxu1 %v3982_v7  ;;  %991 = vmatprep.mubr.f32.mxu1 %v3925_v3 }
 0x210   :  { %3195 = vmatprep.subr.bf16.mxu1 %v3994_v11  ;;  %3201 = vmatpush1.bf16.msra.mxu0 %v4039_v23 }
 0x211   :  { %3203 = vmatprep.subr.bf16.mxu0 %v4063_v30  ;;  %1133 = vmatprep.mubr.f32.mxu0 %v3925_v3 }
 0x212   :  { %2950 = vmatmul.mubr.msk.f32.vlgmr.msra.gmra.mrb[12].mxu1 %vm56_vm0, %v2949_v44 }
 0x213   :  { %3197 = vmatpush1.bf16.msra.mxu1 %v4000_v13  ;;  %1062 = vmatprep.mubr.f32.mxu1 %v3925_v3 }
 0x214   :  { %3205 = vmatpush1.bf16.msra.mxu0 %v4076_v35  ;;  %3231 = vmatprep.subr.bf16.mxu1 %v4037_v22 }
 0x215   :  { %3207 = vmatprep.subr.bf16.mxu0 %v4100_v42 }
 0x216   :  { %2951 = vmatmul.mubr.msk.f32.vlgmr.msra.gmra.mrb[14].mxu1 %vm56_vm0, %v2949_v44 }
 0x217   :  { %3233 = vmatpush1.bf16.msra.mxu1 %v4048_v26  ;;  %1204 = vmatprep.mubr.f32.mxu1 %v3925_v3 }
 0x218   :  { %3209 = vmatpush1.bf16.msra.mxu0 %v4113_v47  ;;  %3235 = vmatprep.subr.bf16.mxu1 %v4074_v34 }
 0x219   :  { %3211 = vmatprep.subr.bf16.mxu0 %v4136_v54 }
 0x21b   :  { %3237 = vmatpush1.bf16.msra.mxu1 %v4086_v38 }
 0x21c   :  { %3213 = vmatpush1.bf16.msra.mxu0 %v4149_v59  ;;  %3239 = vmatprep.subr.bf16.mxu1 %v4111_v46 }
 0x21d   :  { %3215 = vmatprep.subr.bf16.mxu0 %v4172_v2 }
 0x21f   :  { %3241 = vmatpush1.bf16.msra.mxu1 %v4122_v50 }
 0x220   :  { %3217 = vmatpush1.bf16.msra.mxu0 %v4185_v10  ;;  %3243 = vmatprep.subr.bf16.mxu1 %v4147_v58 }
 0x221   :  { %3219 = vmatprep.subr.bf16.mxu0 %v4209_v21 }
 0x223   :  { %3245 = vmatpush1.bf16.msra.mxu1 %v4158_v62 }
 0x224   :  { %3221 = vmatpush1.bf16.msra.mxu0 %v4224_v29  ;;  %3247 = vmatprep.subr.bf16.mxu1 %v4183_v9 }
 0x225   :  { %3223 = vmatprep.subr.bf16.mxu0 %v4239_v37 }
 0x227   :  { %3249 = vmatpush1.bf16.msra.mxu1 %v4197_v16 }
 0x228   :  { %3225 = vmatpush1.bf16.msra.mxu0 %v4272_v53  ;;  %3251 = vmatprep.subr.bf16.mxu1 %v4211_v24 }
 0x229   :  { %3227 = vmatprep.subr.bf16.mxu0 %v4284_v60 }
 0x22b   :  { %3253 = vmatpush1.bf16.msra.mxu1 %v4237_v36 }
 0x22c   :  { %3229 = vmatpush1.bf16.msra.mxu0 %v4299_v5  ;;  %3255 = vmatprep.subr.bf16.mxu1 %v4250_v43 }
 0x22d   :  { %3263 = vmatprep.subr.bf16.mxu0 %v3974_v4 }
 0x22f   :  { %3257 = vmatpush1.bf16.msra.mxu1 %v4274_v55 }
 0x230   :  { %3259 = vmatprep.subr.bf16.mxu1 %v4286_v61 }
 0x233   :  { %3261 = vmatpush1.bf16.msra.mxu1 %v4301_v6 }
 0x234   :  { %3267 = vmatprep.subr.bf16.mxu1 %v3994_v11 }
 0x2e1   :  { %v822_v28 = vpop.f32.mrb[2].mxu0  ;;  %v893_v31 = vpop.f32.mrb[10].mxu1 }
 0x2e2   :  { %v823_v33 = vadd.f32 %v822_v28, %v681_v27  ;;  %v824_v40 = vpop.f32.mrb[3].mxu0  ;;  %v895_v41 = vpop.f32.mrb[11].mxu1  ;;  %v3712_v51 = vadd.f32 %v893_v31, %v4318_v39 }
 0x2e3   :  { %v825_v8 = vadd.f32 %v824_v40, %v683_v15  ;;  %v3713_v52 = vadd.f32 %v895_v41, %v4321_v49 }
 0x2e4   :  { %v2946_v45 = vmul.f32 -1.442695, %v823_v33  ;;  %v2948_v56 = vmul.f32 -1.442695, %v3712_v51 }
 0x2e5   :  { %v2947_v48 = vmul.f32 -1.442695, %v825_v8  ;;  %v2955_v8 = vld [vmem:[%s4797_s0 + $0x20] sm:$0xff] }
 0x2e6   :  { %3793 = vpow2.f32 %v2946_v45 }
 0x2e7   :  { %3795 = vpow2.f32 %v2947_v48 }
 0x2e8   :  { %3797 = vtanh.f32 %v3713_v52 }
 0x2e9   :  { %3799 = vpow2.f32 %v2948_v56 }
 0x2f0   :  { %v3794_v63 = vpop.eup %3793 }
 0x2f1   :  { %v907_v57 = vadd.f32 1.0, %v3794_v63  ;;  %v3796_v1 = vpop.eup %3795 }
 0x2f2   :  { %v908_v12 = vadd.f32 1.0, %v3796_v1  ;;  %v3798_v17 = vpop.eup %3797 }
 0x2f3   :  { %3801 = vrcp.f32 %v907_v57  ;;  %v3800_v25 = vpop.eup %3799 }
 0x2f4   :  { %3803 = vrcp.f32 %v908_v12  ;;  %v909_v27 = vadd.f32 1.0, %v3800_v25 }
 0x2f6   :  { %3805 = vrcp.f32 %v909_v27 }
 0x2fd   :  { %v3802_v14 = vpop.eup %3801 }
 0x2fe   :  { %v918_v32 = vmul.f32 %v3802_v14, %v3798_v17  ;;  %v3804_v44 = vpop.eup %3803 }
 0x2ff   :  { %v917_v15 = vmul.f32 %v3804_v44, %v4383_v0  ;;  %v993_v0 = vpop.f32.mrb[12].mxu1 }
 0x300   :  { %v3806_v31 = vpop.eup %3805  ;;  %v995_v41 = vpop.f32.mrb[13].mxu1  ;;  %v994_v45 = vadd.f32 %v993_v0, %v4312_v19 }
 0x301   :  { %v4436_v28 = vadd.f32 %v918_v32, %v917_v15  ;;  %v996_v48 = vadd.f32 %v995_v41, %v4314_v20 }
 0x303   :  { %3807 = vtanh.f32 %v4436_v28 }
 0x30d   :  { %v3808_v33 = vpop.eup %3807 }
 0x30e   :  { %v921_v40 = vmul.f32 %v3808_v33, %v3806_v31 }
 0x310   :  { %1134 = vmatmul.mubr.f32.vlgmr.msra.gmra.mrb[4].mxu0 %v921_v40  ;;  %1205 = vmatmul.mubr.f32.vlgmr.msra.gmra.mrb[14].mxu1 %v921_v40 }
 0x311   :  { %3265 = vmatpush1.bf16.msra.mxu0 %v3982_v7  ;;  %3269 = vmatpush1.bf16.msra.mxu1 %v4000_v13 }
 0x312   :  { %1304 = vmatprep.mubr.f32.mxu0 %v3925_v3  ;;  %1375 = vmatprep.mubr.f32.mxu1 %v3925_v3 }
 0x313   :  { %3271 = vmatprep.subr.bf16.mxu0 %v4026_v18  ;;  %3303 = vmatprep.subr.bf16.mxu1 %v4037_v22 }
 0x314   :  { %2956 = vmatmul.mubr.msk.f32.vlgmr.msra.gmra.mrb[6].mxu0 %vm56_vm0, %v2955_v8  ;;  %2957 = vmatmul.mubr.msk.f32.vlgmr.msra.gmra.mrb[16].mxu1 %vm56_vm0, %v2955_v8 }
 0x315   :  { %3273 = vmatpush1.bf16.msra.mxu0 %v4039_v23  ;;  %3305 = vmatpush1.bf16.msra.mxu1 %v4048_v26 }
 0x316   :  { %3275 = vmatprep.subr.bf16.mxu0 %v4063_v30  ;;  %3307 = vmatprep.subr.bf16.mxu1 %v4074_v34 }
 0x317   :  { %1446 = vmatprep.mubr.f32.mxu0 %v3925_v3  ;;  %1517 = vmatprep.mubr.f32.mxu1 %v3925_v3 }
 0x319   :  { %3277 = vmatpush1.bf16.msra.mxu0 %v4076_v35  ;;  %3309 = vmatpush1.bf16.msra.mxu1 %v4086_v38 }
 0x31a   :  { %3279 = vmatprep.subr.bf16.mxu0 %v4100_v42  ;;  %3311 = vmatprep.subr.bf16.mxu1 %v4111_v46 }
 0x31d   :  { %3281 = vmatpush1.bf16.msra.mxu0 %v4113_v47  ;;  %3313 = vmatpush1.bf16.msra.mxu1 %v4122_v50 }
 0x31e   :  { %3283 = vmatprep.subr.bf16.mxu0 %v4136_v54  ;;  %3315 = vmatprep.subr.bf16.mxu1 %v4147_v58 }
 0x321   :  { %3285 = vmatpush1.bf16.msra.mxu0 %v4149_v59  ;;  %3317 = vmatpush1.bf16.msra.mxu1 %v4158_v62 }
 0x322   :  { %3287 = vmatprep.subr.bf16.mxu0 %v4172_v2  ;;  %3319 = vmatprep.subr.bf16.mxu1 %v4183_v9 }
 0x325   :  { %3289 = vmatpush1.bf16.msra.mxu0 %v4185_v10  ;;  %3321 = vmatpush1.bf16.msra.mxu1 %v4197_v16 }
 0x326   :  { %3291 = vmatprep.subr.bf16.mxu0 %v4209_v21  ;;  %3323 = vmatprep.subr.bf16.mxu1 %v4211_v24 }
 0x329   :  { %3293 = vmatpush1.bf16.msra.mxu0 %v4224_v29  ;;  %3325 = vmatpush1.bf16.msra.mxu1 %v4237_v36 }
 0x32a   :  { %3295 = vmatprep.subr.bf16.mxu0 %v4239_v37  ;;  %3327 = vmatprep.subr.bf16.mxu1 %v4250_v43 }
 0x32d   :  { %3297 = vmatpush1.bf16.msra.mxu0 %v4272_v53  ;;  %3329 = vmatpush1.bf16.msra.mxu1 %v4274_v55 }
 0x32e   :  { %3299 = vmatprep.subr.bf16.mxu0 %v4284_v60  ;;  %3331 = vmatprep.subr.bf16.mxu1 %v4286_v61 }
 0x331   :  { %3301 = vmatpush1.bf16.msra.mxu0 %v4299_v5  ;;  %3333 = vmatpush1.bf16.msra.mxu1 %v4301_v6 }
 0x332   :  { %3335 = vmatprep.subr.bf16.mxu0 %v3974_v4  ;;  %3339 = vmatprep.subr.bf16.mxu1 %v3994_v11 }
 0x3e3   :  { %v1135_v51 = vpop.f32.mrb[4].mxu0  ;;  %v1206_v52 = vpop.f32.mrb[14].mxu1 }
 0x3e4   :  { %v1136_v56 = vadd.f32 %v1135_v51, %v994_v45  ;;  %v1137_v63 = vpop.f32.mrb[5].mxu0  ;;  %v1208_v57 = vpop.f32.mrb[15].mxu1  ;;  %v3718_v25 = vadd.f32 %v1206_v52, %v4318_v39 }
 0x3e5   :  { %v1138_v1 = vadd.f32 %v1137_v63, %v996_v48  ;;  %v3719_v14 = vadd.f32 %v1208_v57, %v4321_v49 }
 0x3e6   :  { %v2952_v12 = vmul.f32 -1.442695, %v1136_v56  ;;  %v2954_v32 = vmul.f32 -1.442695, %v3718_v25 }
 0x3e7   :  { %v2953_v17 = vmul.f32 -1.442695, %v1138_v1 }
 0x3e8   :  { %3809 = vpow2.f32 %v2952_v12 }
 0x3e9   :  { %3811 = vpow2.f32 %v2953_v17 }
 0x3ea   :  { %3813 = vtanh.f32 %v3719_v14 }
 0x3eb   :  { %3815 = vpow2.f32 %v2954_v32 }
 0x3f2   :  { %v3810_v44 = vpop.eup %3809 }
 0x3f3   :  { %v1220_v27 = vadd.f32 1.0, %v3810_v44  ;;  %v3812_v15 = vpop.eup %3811 }
 0x3f4   :  { %v1221_v31 = vadd.f32 1.0, %v3812_v15  ;;  %v3814_v33 = vpop.eup %3813 }
 0x3f5   :  { %3817 = vrcp.f32 %v1220_v27  ;;  %v3816_v40 = vpop.eup %3815 }
 0x3f6   :  { %3819 = vrcp.f32 %v1221_v31  ;;  %v1222_v45 = vadd.f32 1.0, %v3816_v40 }
 0x3f8   :  { %3821 = vrcp.f32 %v1222_v45 }
 0x3ff   :  { %v3818_v0 = vpop.eup %3817 }
 0x400   :  { %v1231_v41 = vmul.f32 %v3818_v0, %v3814_v33  ;;  %v3820_v8 = vpop.eup %3819 }
 0x401   :  { %v1230_v48 = vmul.f32 %v3820_v8, %v4436_v28  ;;  %v2961_v28 = vld [vmem:[%s4797_s0 + $0x28] sm:$0xff] }
 0x402   :  { %v3822_v52 = vpop.eup %3821 }
 0x403   :  { %v4489_v51 = vadd.f32 %v1231_v41, %v1230_v48 }
 0x405   :  { %3823 = vtanh.f32 %v4489_v51 }
 0x40f   :  { %v3824_v56 = vpop.eup %3823 }
 0x410   :  { %v1234_v63 = vmul.f32 %v3824_v56, %v3822_v52 }
 0x412   :  { %1447 = vmatmul.mubr.f32.vlgmr.msra.gmra.mrb[6].mxu0 %v1234_v63  ;;  %1518 = vmatmul.mubr.f32.vlgmr.msra.gmra.mrb[16].mxu1 %v1234_v63 }
 0x413   :  { %3337 = vmatpush1.bf16.msra.mxu0 %v3982_v7  ;;  %3341 = vmatpush1.bf16.msra.mxu1 %v4000_v13 }
 0x414   :  { %1617 = vmatprep.mubr.f32.mxu0 %v3925_v3  ;;  %1688 = vmatprep.mubr.f32.mxu1 %v3925_v3 }
 0x415   :  { %3343 = vmatprep.subr.bf16.mxu0 %v4026_v18  ;;  %3375 = vmatprep.subr.bf16.mxu1 %v4037_v22 }
 0x416   :  { %2962 = vmatmul.mubr.msk.f32.vlgmr.msra.gmra.mrb[8].mxu0 %vm56_vm0, %v2961_v28  ;;  %2963 = vmatmul.mubr.msk.f32.vlgmr.msra.gmra.mrb[18].mxu1 %vm56_vm0, %v2961_v28 }
 0x417   :  { %3345 = vmatpush1.bf16.msra.mxu0 %v4039_v23  ;;  %3377 = vmatpush1.bf16.msra.mxu1 %v4048_v26 }
 0x418   :  { %3347 = vmatprep.subr.bf16.mxu0 %v4063_v30  ;;  %3379 = vmatprep.subr.bf16.mxu1 %v4074_v34 }
 0x419   :  { %1759 = vmatprep.mubr.f32.mxu0 %v3925_v3  ;;  %1830 = vmatprep.mubr.f32.mxu1 %v3925_v3 }
 0x41b   :  { %3349 = vmatpush1.bf16.msra.mxu0 %v4076_v35  ;;  %3381 = vmatpush1.bf16.msra.mxu1 %v4086_v38 }
 0x41c   :  { %3351 = vmatprep.subr.bf16.mxu0 %v4100_v42  ;;  %3383 = vmatprep.subr.bf16.mxu1 %v4111_v46 }
 0x41f   :  { %3353 = vmatpush1.bf16.msra.mxu0 %v4113_v47  ;;  %3385 = vmatpush1.bf16.msra.mxu1 %v4122_v50 }
 0x420   :  { %3355 = vmatprep.subr.bf16.mxu0 %v4136_v54  ;;  %3387 = vmatprep.subr.bf16.mxu1 %v4147_v58 }
 0x423   :  { %3357 = vmatpush1.bf16.msra.mxu0 %v4149_v59  ;;  %3389 = vmatpush1.bf16.msra.mxu1 %v4158_v62 }
 0x424   :  { %3359 = vmatprep.subr.bf16.mxu0 %v4172_v2  ;;  %3391 = vmatprep.subr.bf16.mxu1 %v4183_v9 }
 0x427   :  { %3361 = vmatpush1.bf16.msra.mxu0 %v4185_v10  ;;  %3393 = vmatpush1.bf16.msra.mxu1 %v4197_v16 }
 0x428   :  { %3363 = vmatprep.subr.bf16.mxu0 %v4209_v21  ;;  %3395 = vmatprep.subr.bf16.mxu1 %v4211_v24 }
 0x42b   :  { %3365 = vmatpush1.bf16.msra.mxu0 %v4224_v29  ;;  %3397 = vmatpush1.bf16.msra.mxu1 %v4237_v36 }
 0x42c   :  { %3367 = vmatprep.subr.bf16.mxu0 %v4239_v37  ;;  %3399 = vmatprep.subr.bf16.mxu1 %v4250_v43 }
 0x42f   :  { %3369 = vmatpush1.bf16.msra.mxu0 %v4272_v53  ;;  %3401 = vmatpush1.bf16.msra.mxu1 %v4274_v55 }
 0x430   :  { %3371 = vmatprep.subr.bf16.mxu0 %v4284_v60  ;;  %3403 = vmatprep.subr.bf16.mxu1 %v4286_v61 }
 0x433   :  { %3373 = vmatpush1.bf16.msra.mxu0 %v4299_v5  ;;  %3405 = vmatpush1.bf16.msra.mxu1 %v4301_v6 }
 0x434   :  { %3407 = vmatprep.subr.bf16.mxu0 %v3974_v4  ;;  %3411 = vmatprep.subr.bf16.mxu1 %v3994_v11 }
 0x4e5   :  { %v1448_v57 = vpop.f32.mrb[6].mxu0  ;;  %v1519_v1 = vpop.f32.mrb[16].mxu1 }
 0x4e6   :  { %v3720_v12 = vadd.f32 %v1448_v57, %v4312_v19  ;;  %v1450_v17 = vpop.f32.mrb[7].mxu0  ;;  %v1521_v25 = vpop.f32.mrb[17].mxu1  ;;  %v3722_v27 = vadd.f32 %v1519_v1, %v4318_v39 }
 0x4e7   :  { %v3721_v14 = vadd.f32 %v1450_v17, %v4314_v20  ;;  %v3723_v15 = vadd.f32 %v1521_v25, %v4321_v49 }
 0x4e8   :  { %v2958_v32 = vmul.f32 -1.442695, %v3720_v12  ;;  %v2960_v31 = vmul.f32 -1.442695, %v3722_v27 }
 0x4e9   :  { %v2959_v44 = vmul.f32 -1.442695, %v3721_v14 }
 0x4ea   :  { %3825 = vpow2.f32 %v2958_v32 }
 0x4eb   :  { %3827 = vpow2.f32 %v2959_v44 }
 0x4ec   :  { %3829 = vtanh.f32 %v3723_v15 }
 0x4ed   :  { %3831 = vpow2.f32 %v2960_v31 }
 0x4f4   :  { %v3826_v33 = vpop.eup %3825 }
 0x4f5   :  { %v1533_v40 = vadd.f32 1.0, %v3826_v33  ;;  %v3828_v0 = vpop.eup %3827 }
 0x4f6   :  { %v1534_v41 = vadd.f32 1.0, %v3828_v0  ;;  %v3830_v8 = vpop.eup %3829 }
 0x4f7   :  { %3833 = vrcp.f32 %v1533_v40  ;;  %v3832_v45 = vpop.eup %3831 }
 0x4f8   :  { %3835 = vrcp.f32 %v1534_v41  ;;  %v1535_v63 = vadd.f32 1.0, %v3832_v45 }
 0x4fa   :  { %3837 = vrcp.f32 %v1535_v63 }
 0x501   :  { %v3834_v48 = vpop.eup %3833 }
 0x502   :  { %v1544_v52 = vmul.f32 %v3834_v48, %v3830_v8  ;;  %v3836_v56 = vpop.eup %3835 }
 0x503   :  { %v1543_v28 = vmul.f32 %v3836_v56, %v4489_v51  ;;  %v2967_v51 = vld [vmem:[%s4797_s0 + $0x30] sm:$0xff] }
 0x504   :  { %v3838_v1 = vpop.eup %3837 }
 0x505   :  { %v4542_v57 = vadd.f32 %v1544_v52, %v1543_v28 }
 0x507   :  { %3839 = vtanh.f32 %v4542_v57 }
 0x511   :  { %v3840_v12 = vpop.eup %3839 }
 0x512   :  { %v1547_v17 = vmul.f32 %v3840_v12, %v3838_v1 }
 0x514   :  { %1760 = vmatmul.mubr.f32.vlgmr.msra.gmra.mrb[8].mxu0 %v1547_v17  ;;  %1831 = vmatmul.mubr.f32.vlgmr.msra.gmra.mrb[18].mxu1 %v1547_v17 }
 0x515   :  { %3409 = vmatpush1.bf16.msra.mxu0 %v3982_v7  ;;  %3413 = vmatpush1.bf16.msra.mxu1 %v4000_v13 }
 0x516   :  { %1930 = vmatprep.mubr.f32.mxu0 %v3925_v3  ;;  %2001 = vmatprep.mubr.f32.mxu1 %v3925_v3 }
 0x517   :  { %3415 = vmatprep.subr.bf16.mxu0 %v4026_v18  ;;  %3447 = vmatprep.subr.bf16.mxu1 %v4037_v22 }
 0x518   :  { %2968 = vmatmul.mubr.msk.f32.vlgmr.msra.gmra.mrb[10].mxu0 %vm56_vm0, %v2967_v51  ;;  %2969 = vmatmul.mubr.msk.f32.vlgmr.msra.gmra.mrb[20].mxu1 %vm56_vm0, %v2967_v51 }
 0x519   :  { %3417 = vmatpush1.bf16.msra.mxu0 %v4039_v23  ;;  %3449 = vmatpush1.bf16.msra.mxu1 %v4048_v26 }
 0x51a   :  { %3419 = vmatprep.subr.bf16.mxu0 %v4063_v30  ;;  %3451 = vmatprep.subr.bf16.mxu1 %v4074_v34 }
 0x51b   :  { %2072 = vmatprep.mubr.f32.mxu0 %v3925_v3  ;;  %2143 = vmatprep.mubr.f32.mxu1 %v3925_v3 }
 0x51d   :  { %3421 = vmatpush1.bf16.msra.mxu0 %v4076_v35  ;;  %3453 = vmatpush1.bf16.msra.mxu1 %v4086_v38 }
 0x51e   :  { %3423 = vmatprep.subr.bf16.mxu0 %v4100_v42  ;;  %3455 = vmatprep.subr.bf16.mxu1 %v4111_v46 }
 0x521   :  { %3425 = vmatpush1.bf16.msra.mxu0 %v4113_v47  ;;  %3457 = vmatpush1.bf16.msra.mxu1 %v4122_v50 }
 0x522   :  { %3427 = vmatprep.subr.bf16.mxu0 %v4136_v54  ;;  %3459 = vmatprep.subr.bf16.mxu1 %v4147_v58 }
 0x525   :  { %3429 = vmatpush1.bf16.msra.mxu0 %v4149_v59  ;;  %3461 = vmatpush1.bf16.msra.mxu1 %v4158_v62 }
 0x526   :  { %3431 = vmatprep.subr.bf16.mxu0 %v4172_v2  ;;  %3463 = vmatprep.subr.bf16.mxu1 %v4183_v9 }
 0x529   :  { %3433 = vmatpush1.bf16.msra.mxu0 %v4185_v10  ;;  %3465 = vmatpush1.bf16.msra.mxu1 %v4197_v16 }
 0x52a   :  { %3435 = vmatprep.subr.bf16.mxu0 %v4209_v21  ;;  %3467 = vmatprep.subr.bf16.mxu1 %v4211_v24 }
 0x52d   :  { %3437 = vmatpush1.bf16.msra.mxu0 %v4224_v29  ;;  %3469 = vmatpush1.bf16.msra.mxu1 %v4237_v36 }
 0x52e   :  { %3439 = vmatprep.subr.bf16.mxu0 %v4239_v37  ;;  %3471 = vmatprep.subr.bf16.mxu1 %v4250_v43 }
 0x531   :  { %3441 = vmatpush1.bf16.msra.mxu0 %v4272_v53  ;;  %3473 = vmatpush1.bf16.msra.mxu1 %v4274_v55 }
 0x532   :  { %3443 = vmatprep.subr.bf16.mxu0 %v4284_v60  ;;  %3475 = vmatprep.subr.bf16.mxu1 %v4286_v61 }
 0x535   :  { %3445 = vmatpush1.bf16.msra.mxu0 %v4299_v5  ;;  %3477 = vmatpush1.bf16.msra.mxu1 %v4301_v6 }
 0x536   :  { %3479 = vmatprep.subr.bf16.mxu0 %v3974_v4  ;;  %3483 = vmatprep.subr.bf16.mxu1 %v3994_v11 }
 0x5e7   :  { %v1761_v25 = vpop.f32.mrb[8].mxu0  ;;  %v1832_v14 = vpop.f32.mrb[18].mxu1 }
 0x5e8   :  { %v3724_v32 = vadd.f32 %v1761_v25, %v4312_v19  ;;  %v1763_v44 = vpop.f32.mrb[9].mxu0  ;;  %v1834_v27 = vpop.f32.mrb[19].mxu1  ;;  %v3726_v40 = vadd.f32 %v1832_v14, %v4318_v39 }
 0x5e9   :  { %v3725_v15 = vadd.f32 %v1763_v44, %v4314_v20  ;;  %v3727_v0 = vadd.f32 %v1834_v27, %v4321_v49 }
 0x5ea   :  { %v2964_v31 = vmul.f32 -1.442695, %v3724_v32  ;;  %v2966_v41 = vmul.f32 -1.442695, %v3726_v40 }
 0x5eb   :  { %v2965_v33 = vmul.f32 -1.442695, %v3725_v15 }
 0x5ec   :  { %3841 = vpow2.f32 %v2964_v31 }
 0x5ed   :  { %3843 = vpow2.f32 %v2965_v33 }
 0x5ee   :  { %3845 = vtanh.f32 %v3727_v0 }
 0x5ef   :  { %3847 = vpow2.f32 %v2966_v41 }
 0x5f6   :  { %v3842_v4 = vpop.eup %3841 }
 0x5f7   :  { %v1846_v8 = vadd.f32 1.0, %v3842_v4  ;;  %v3844_v11 = vpop.eup %3843 }
 0x5f8   :  { %v1847_v45 = vadd.f32 1.0, %v3844_v11  ;;  %v3846_v48 = vpop.eup %3845 }
 0x5f9   :  { %3849 = vrcp.f32 %v1846_v8  ;;  %v3848_v52 = vpop.eup %3847 }
 0x5fa   :  { %3851 = vrcp.f32 %v1847_v45  ;;  %v1848_v1 = vadd.f32 1.0, %v3848_v52 }
 0x5fc   :  { %3853 = vrcp.f32 %v1848_v1 }
 0x603   :  { %v3850_v56 = vpop.eup %3849 }
 0x604   :  { %v1857_v63 = vmul.f32 %v3850_v56, %v3846_v48  ;;  %v3852_v28 = vpop.eup %3851 }
 0x605   :  { %v1856_v12 = vmul.f32 %v3852_v28, %v4542_v57  ;;  %v2973_v57 = vld [vmem:[%s4797_s0 + $0x38] sm:$0xff] }
 0x606   :  { %v3854_v51 = vpop.eup %3853 }
 0x607   :  { %v4595_v17 = vadd.f32 %v1857_v63, %v1856_v12 }
 0x609   :  { %3855 = vtanh.f32 %v4595_v17 }
 0x613   :  { %v3856_v25 = vpop.eup %3855 }
 0x614   :  { %v1860_v14 = vmul.f32 %v3856_v25, %v3854_v51 }
 0x616   :  { %2073 = vmatmul.mubr.f32.vlgmr.msra.gmra.mrb[10].mxu0 %v1860_v14  ;;  %2144 = vmatmul.mubr.f32.vlgmr.msra.gmra.mrb[20].mxu1 %v1860_v14 }
 0x617   :  { %3481 = vmatpush1.bf16.msra.mxu0 %v3982_v7  ;;  %3485 = vmatpush1.bf16.msra.mxu1 %v4000_v13 }
 0x618   :  { %2243 = vmatprep.mubr.f32.mxu0 %v3925_v3  ;;  %2314 = vmatprep.mubr.f32.mxu1 %v3925_v3 }
 0x619   :  { %3487 = vmatprep.subr.bf16.mxu0 %v4026_v18  ;;  %3519 = vmatprep.subr.bf16.mxu1 %v4037_v22 }
 0x61a   :  { %2974 = vmatmul.mubr.msk.f32.vlgmr.msra.gmra.mrb[12].mxu0 %vm56_vm0, %v2973_v57  ;;  %2975 = vmatmul.mubr.msk.f32.vlgmr.msra.gmra.mrb[22].mxu1 %vm56_vm0, %v2973_v57 }
 0x61b   :  { %3489 = vmatpush1.bf16.msra.mxu0 %v4039_v23  ;;  %3521 = vmatpush1.bf16.msra.mxu1 %v4048_v26 }
 0x61c   :  { %3491 = vmatprep.subr.bf16.mxu0 %v4063_v30  ;;  %3523 = vmatprep.subr.bf16.mxu1 %v4074_v34 }
 0x61d   :  { %2385 = vmatprep.mubr.f32.mxu0 %v3925_v3  ;;  %2456 = vmatprep.mubr.f32.mxu1 %v3925_v3 }
 0x61f   :  { %3493 = vmatpush1.bf16.msra.mxu0 %v4076_v35  ;;  %3525 = vmatpush1.bf16.msra.mxu1 %v4086_v38 }
 0x620   :  { %3495 = vmatprep.subr.bf16.mxu0 %v4100_v42  ;;  %3527 = vmatprep.subr.bf16.mxu1 %v4111_v46 }
 0x623   :  { %3497 = vmatpush1.bf16.msra.mxu0 %v4113_v47  ;;  %3529 = vmatpush1.bf16.msra.mxu1 %v4122_v50 }
 0x624   :  { %3499 = vmatprep.subr.bf16.mxu0 %v4136_v54  ;;  %3531 = vmatprep.subr.bf16.mxu1 %v4147_v58 }
 0x627   :  { %3501 = vmatpush1.bf16.msra.mxu0 %v4149_v59  ;;  %3533 = vmatpush1.bf16.msra.mxu1 %v4158_v62 }
 0x628   :  { %3503 = vmatprep.subr.bf16.mxu0 %v4172_v2  ;;  %3535 = vmatprep.subr.bf16.mxu1 %v4183_v9 }
 0x62b   :  { %3505 = vmatpush1.bf16.msra.mxu0 %v4185_v10  ;;  %3537 = vmatpush1.bf16.msra.mxu1 %v4197_v16 }
 0x62c   :  { %3507 = vmatprep.subr.bf16.mxu0 %v4209_v21  ;;  %3539 = vmatprep.subr.bf16.mxu1 %v4211_v24 }
 0x62f   :  { %3509 = vmatpush1.bf16.msra.mxu0 %v4224_v29  ;;  %3541 = vmatpush1.bf16.msra.mxu1 %v4237_v36 }
 0x630   :  { %3511 = vmatprep.subr.bf16.mxu0 %v4239_v37  ;;  %3543 = vmatprep.subr.bf16.mxu1 %v4250_v43 }
 0x633   :  { %3513 = vmatpush1.bf16.msra.mxu0 %v4272_v53  ;;  %3545 = vmatpush1.bf16.msra.mxu1 %v4274_v55 }
 0x634   :  { %3515 = vmatprep.subr.bf16.mxu0 %v4284_v60  ;;  %3547 = vmatprep.subr.bf16.mxu1 %v4286_v61 }
 0x637   :  { %3517 = vmatpush1.bf16.msra.mxu0 %v4299_v5  ;;  %3549 = vmatpush1.bf16.msra.mxu1 %v4301_v6 }
 0x638   :  { %3551 = vmatprep.subr.bf16.mxu0 %v4026_v18  ;;  %3583 = vmatprep.subr.bf16.mxu1 %v4037_v22 }
 0x6e9   :  { %v2074_v7 = vpop.f32.mrb[10].mxu0  ;;  %v2145_v13 = vpop.f32.mrb[20].mxu1 }
 0x6ea   :  { %v3728_v32 = vadd.f32 %v2074_v7, %v4312_v19  ;;  %v2076_v44 = vpop.f32.mrb[11].mxu0  ;;  %v2147_v27 = vpop.f32.mrb[21].mxu1  ;;  %v3730_v40 = vadd.f32 %v2145_v13, %v4318_v39 }
 0x6eb   :  { %v3729_v15 = vadd.f32 %v2076_v44, %v4314_v20  ;;  %v3731_v0 = vadd.f32 %v2147_v27, %v4321_v49 }
 0x6ec   :  { %v2970_v31 = vmul.f32 -1.442695, %v3728_v32  ;;  %v2972_v41 = vmul.f32 -1.442695, %v3730_v40 }
 0x6ed   :  { %v2971_v33 = vmul.f32 -1.442695, %v3729_v15 }
 0x6ee   :  { %3857 = vpow2.f32 %v2970_v31 }
 0x6ef   :  { %3859 = vpow2.f32 %v2971_v33 }
 0x6f0   :  { %3861 = vtanh.f32 %v3731_v0 }
 0x6f1   :  { %3863 = vpow2.f32 %v2972_v41 }
 0x6f8   :  { %v3858_v4 = vpop.eup %3857 }
 0x6f9   :  { %v2159_v8 = vadd.f32 1.0, %v3858_v4  ;;  %v3860_v11 = vpop.eup %3859 }
 0x6fa   :  { %v2160_v45 = vadd.f32 1.0, %v3860_v11  ;;  %v3862_v48 = vpop.eup %3861 }
 0x6fb   :  { %3865 = vrcp.f32 %v2159_v8  ;;  %v3864_v52 = vpop.eup %3863 }
 0x6fc   :  { %3867 = vrcp.f32 %v2160_v45  ;;  %v2161_v1 = vadd.f32 1.0, %v3864_v52 }
 0x6fe   :  { %3869 = vrcp.f32 %v2161_v1 }
 0x705   :  { %v3866_v56 = vpop.eup %3865 }
 0x706   :  { %v2170_v63 = vmul.f32 %v3866_v56, %v3862_v48  ;;  %v3868_v28 = vpop.eup %3867 }
 0x707   :  { %v2169_v12 = vmul.f32 %v3868_v28, %v4595_v17 }
 0x708   :  { %v3870_v25 = vpop.eup %3869 }
 0x709   :  { %v4648_v51 = vadd.f32 %v2170_v63, %v2169_v12 }
 0x70b   :  { %3871 = vtanh.f32 %v4648_v51 }
 0x715   :  { %v3872_v14 = vpop.eup %3871 }
 0x716   :  { %v2173_v57 = vmul.f32 %v3872_v14, %v3870_v25  ;;  %v2822_v14 = vld [vmem:[%s4800_s4 + $0x18] sm:$0xff] }
 0x718   :  { %2386 = vmatmul.mubr.f32.vlgmr.msra.gmra.mrb[12].mxu0 %v2173_v57  ;;  %2457 = vmatmul.mubr.f32.vlgmr.msra.gmra.mrb[22].mxu1 %v2173_v57 }
 0x719   :  { %3553 = vmatpush1.bf16.msra.mxu0 %v4039_v23  ;;  %3585 = vmatpush1.bf16.msra.mxu1 %v4048_v26 }
 0x71a   :  { %3555 = vmatprep.subr.bf16.mxu0 %v4063_v30  ;;  %3587 = vmatprep.subr.bf16.mxu1 %v4074_v34 }
 0x71b   :  { %2551 = vmatprep.mubr.f32.mxu0 %v3925_v3  ;;  %2622 = vmatprep.mubr.f32.mxu1 %v3925_v3 }
 0x71d   :  { %3557 = vmatpush1.bf16.msra.mxu0 %v4076_v35  ;;  %3589 = vmatpush1.bf16.msra.mxu1 %v4086_v38 }
 0x71e   :  { %3559 = vmatprep.subr.bf16.mxu0 %v4100_v42  ;;  %3591 = vmatprep.subr.bf16.mxu1 %v4111_v46 }
 0x721   :  { %3561 = vmatpush1.bf16.msra.mxu0 %v4113_v47  ;;  %3593 = vmatpush1.bf16.msra.mxu1 %v4122_v50 }
 0x722   :  { %3563 = vmatprep.subr.bf16.mxu0 %v4136_v54  ;;  %3595 = vmatprep.subr.bf16.mxu1 %v4147_v58 }
 0x725   :  { %3565 = vmatpush1.bf16.msra.mxu0 %v4149_v59  ;;  %3597 = vmatpush1.bf16.msra.mxu1 %v4158_v62 }
 0x726   :  { %3567 = vmatprep.subr.bf16.mxu0 %v4172_v2  ;;  %3599 = vmatprep.subr.bf16.mxu1 %v4183_v9 }
 0x729   :  { %3569 = vmatpush1.bf16.msra.mxu0 %v4185_v10  ;;  %3601 = vmatpush1.bf16.msra.mxu1 %v4197_v16 }
 0x72a   :  { %3571 = vmatprep.subr.bf16.mxu0 %v4209_v21  ;;  %3603 = vmatprep.subr.bf16.mxu1 %v4211_v24 }
 0x72d   :  { %3573 = vmatpush1.bf16.msra.mxu0 %v4224_v29  ;;  %3605 = vmatpush1.bf16.msra.mxu1 %v4237_v36 }
 0x72e   :  { %3575 = vmatprep.subr.bf16.mxu0 %v4239_v37  ;;  %3607 = vmatprep.subr.bf16.mxu1 %v4250_v43 }
 0x731   :  { %3577 = vmatpush1.bf16.msra.mxu0 %v4272_v53  ;;  %3609 = vmatpush1.bf16.msra.mxu1 %v4274_v55 }
 0x732   :  { %3579 = vmatprep.subr.bf16.mxu0 %v4284_v60  ;;  %3611 = vmatprep.subr.bf16.mxu1 %v4286_v61 }
 0x735   :  { %3581 = vmatpush1.bf16.msra.mxu0 %v4299_v5  ;;  %3613 = vmatpush1.bf16.msra.mxu1 %v4301_v6 }
 0x736   :  { %3615 = vmatprep.subr.bf16.mxu0 %v4026_v18  ;;  %3647 = vmatprep.subr.bf16.mxu1 %v4037_v22 }
 0x7eb   :  { %v2387_v17 = vpop.f32.mrb[12].mxu0  ;;  %v2458_v7 = vpop.f32.mrb[22].mxu1 }
 0x7ec   :  { %v3732_v13 = vadd.f32 %v2387_v17, %v4312_v19  ;;  %v2389_v32 = vpop.f32.mrb[13].mxu0  ;;  %v2460_v44 = vpop.f32.mrb[23].mxu1  ;;  %v3734_v33 = vadd.f32 %v2458_v7, %v4318_v39  ;;  %v2823_v17 = vld [vmem:[%s4800_s4 + $0x20] sm:$0xff]  ;;  %v2824_v7 = vld [vmem:[%s4800_s4 + $0x28] sm:$0xff] }
 0x7ed   :  { %v3733_v27 = vadd.f32 %v2389_v32, %v4314_v20  ;;  %v3735_v40 = vadd.f32 %v2460_v44, %v4321_v49  ;;  %v2825_v32 = vld [vmem:[%s4800_s4 + $0x30] sm:$0xff]  ;;  %v2826_v44 = vld [vmem:[%s4800_s4 + $0x38] sm:$0xff] }
 0x7ee   :  { %v2976_v15 = vmul.f32 -1.442695, %v3732_v13  ;;  %v2978_v0 = vmul.f32 -1.442695, %v3734_v33  ;;  %v3685_v13 = vpack.c.bf16 %v2824_v7, %v2823_v17 }
 0x7ef   :  { %v2977_v31 = vmul.f32 -1.442695, %v3733_v27  ;;  %v3688_v27 = vpack.c.bf16 %v2826_v44, %v2825_v32 }
 0x7f0   :  { %3873 = vpow2.f32 %v2976_v15  ;;  %v2827_v15 = vld [vmem:[%s4800_s4 + $0x40] sm:$0xff] }
 0x7f1   :  { %3875 = vpow2.f32 %v2977_v31  ;;  %v2828_v31 = vld [vmem:[%s4800_s4 + $0x48] sm:$0xff] }
 0x7f2   :  { %3877 = vtanh.f32 %v3735_v40  ;;  %v3691_v33 = vpack.c.bf16 %v2828_v31, %v2827_v15  ;;  %v2829_v40 = vld [vmem:[%s4800_s4 + $0x50] sm:$0xff] }
 0x7f3   :  { %3879 = vpow2.f32 %v2978_v0  ;;  %v2830_v0 = vld [vmem:[%s4800_s4 + $0x58] sm:$0xff] }
 0x7fa   :  { %v3874_v18 = vpop.eup %3873 }
 0x7fb   :  { %v2472_v41 = vadd.f32 1.0, %v3874_v18  ;;  %v3876_v22 = vpop.eup %3875  ;;  %v3694_v18 = vpack.c.bf16 %v2830_v0, %v2829_v40 }
 0x7fc   :  { %v2473_v4 = vadd.f32 1.0, %v3876_v22  ;;  %v3878_v8 = vpop.eup %3877  ;;  %v2832_v22 = vld [vmem:[%s4800_s4 + $0x68] sm:$0xff] }
 0x7fd   :  { %3881 = vrcp.f32 %v2472_v41  ;;  %v3880_v11 = vpop.eup %3879  ;;  %v2831_v41 = vld [vmem:[%s4800_s4 + $0x60] sm:$0xff] }
 0x7fe   :  { %3883 = vrcp.f32 %v2473_v4  ;;  %v2474_v56 = vadd.f32 1.0, %v3880_v11  ;;  %v3697_v4 = vpack.c.bf16 %v2832_v22, %v2831_v41  ;;  %v2834_v11 = vld [vmem:[%s4800_s4 + $0x78] sm:$0xff] }
 0x800   :  { %3885 = vrcp.f32 %v2474_v56 }
 0x807   :  { %v3882_v45 = vpop.eup %3881 }
 0x808   :  { %v2483_v48 = vmul.f32 %v3882_v45, %v3878_v8  ;;  %v3884_v52 = vpop.eup %3883  ;;  %v2833_v8 = vld [vmem:[%s4800_s4 + $0x70] sm:$0xff] }
 0x809   :  { %v2482_v63 = vmul.f32 %v3884_v52, %v4648_v51  ;;  %v2821_v51 = vld [vmem:[%s4800_s4 + $0x10] sm:$0xff]  ;;  %v3700_v45 = vpack.c.bf16 %v2834_v11, %v2833_v8 }
 0x80a   :  { %v3886_v1 = vpop.eup %3885  ;;  %v3682_v57 = vpack.c.bf16 %v2822_v14, %v2821_v51 }
 0x80b   :  { %v4690_v28 = vadd.f32 %v2483_v48, %v2482_v63 }
 0x80d   :  { %3887 = vtanh.f32 %v4690_v28 }
 0x817   :  { %v3888_v12 = vpop.eup %3887 }
 0x818   :  { %v2486_v25 = vmul.f32 %v3888_v12, %v3886_v1 }
 0x81a   :  { %2552 = vmatmul.mubr.f32.vlgmr.msra.gmra.mrb[14].mxu0 %v2486_v25  ;;  %2623 = vmatmul.mubr.f32.vlgmr.msra.gmra.mrb[24].mxu1 %v2486_v25 }
 0x81b   :  { %3617 = vmatpush1.bf16.msra.mxu0 %v4039_v23  ;;  %3649 = vmatpush1.bf16.msra.mxu1 %v4048_v26 }
 0x81c   :  { %3619 = vmatprep.subr.bf16.mxu0 %v4063_v30  ;;  %3651 = vmatprep.subr.bf16.mxu1 %v4074_v34 }
 0x81d   :  { %2717 = vmatprep.mubr.f32.mxu0 %v3925_v3  ;;  %2788 = vmatprep.mubr.f32.mxu1 %v3925_v3 }
 0x81f   :  { %3621 = vmatpush1.bf16.msra.mxu0 %v4076_v35  ;;  %3653 = vmatpush1.bf16.msra.mxu1 %v4086_v38 }
 0x820   :  { %3623 = vmatprep.subr.bf16.mxu0 %v4100_v42  ;;  %3655 = vmatprep.subr.bf16.mxu1 %v4111_v46 }
 0x823   :  { %3625 = vmatpush1.bf16.msra.mxu0 %v4113_v47  ;;  %3657 = vmatpush1.bf16.msra.mxu1 %v4122_v50 }
 0x824   :  { %3627 = vmatprep.subr.bf16.mxu0 %v4136_v54  ;;  %3659 = vmatprep.subr.bf16.mxu1 %v4147_v58 }
 0x827   :  { %3629 = vmatpush1.bf16.msra.mxu0 %v4149_v59  ;;  %3661 = vmatpush1.bf16.msra.mxu1 %v4158_v62 }
 0x828   :  { %3631 = vmatprep.subr.bf16.mxu0 %v4172_v2  ;;  %3663 = vmatprep.subr.bf16.mxu1 %v4183_v9 }
 0x82b   :  { %3633 = vmatpush1.bf16.msra.mxu0 %v4185_v10  ;;  %3665 = vmatpush1.bf16.msra.mxu1 %v4197_v16 }
 0x82c   :  { %3635 = vmatprep.subr.bf16.mxu0 %v4209_v21  ;;  %3667 = vmatprep.subr.bf16.mxu1 %v4211_v24 }
 0x82f   :  { %3637 = vmatpush1.bf16.msra.mxu0 %v4224_v29  ;;  %3669 = vmatpush1.bf16.msra.mxu1 %v4237_v36 }
 0x830   :  { %3639 = vmatprep.subr.bf16.mxu0 %v4239_v37  ;;  %3671 = vmatprep.subr.bf16.mxu1 %v4250_v43 }
 0x833   :  { %3641 = vmatpush1.bf16.msra.mxu0 %v4272_v53  ;;  %3673 = vmatpush1.bf16.msra.mxu1 %v4274_v55 }
 0x834   :  { %3643 = vmatprep.subr.bf16.mxu0 %v4284_v60  ;;  %3675 = vmatprep.subr.bf16.mxu1 %v4286_v61  ;;  %v2819_v60 = vld [vmem:[%s4800_s4] sm:$0xff]  ;;  %v2820_v61 = vld [vmem:[%s4800_s4 + $0x8] sm:$0xff] }
 0x837   :  { %3645 = vmatpush1.bf16.msra.mxu0 %v4299_v5  ;;  %3677 = vmatpush1.bf16.msra.mxu1 %v4301_v6  ;;  %v3679_v5 = vpack.c.bf16 %v2820_v61, %v2819_v60  ;;  %v3926_v6 = vmov 0.0|0.0  }
 0x838   :  { %3678 = vmatprep.subr.bf16.mxu0 %v3926_v6 }
 0x8ed   :  { %v2553_v23 = vpop.f32.mrb[14].mxu0  ;;  %v2624_v26 = vpop.f32.mrb[24].mxu1 }
 0x8ee   :  { %v2554_v30 = vadd.f32 %v2553_v23, %v4312_v19  ;;  %v2555_v34 = vpop.f32.mrb[15].mxu0  ;;  %v2626_v35 = vpop.f32.mrb[25].mxu1  ;;  %v2625_v47 = vadd.f32 %v2624_v26, %v4318_v39 }
 0x8ef   :  { %v2556_v38 = vadd.f32 %v2555_v34, %v4314_v20  ;;  %v2627_v50 = vadd.f32 %v2626_v35, %v4321_v49 }
 0x8f0   :  { %v2979_v42 = vmul.f32 -1.442695, %v2554_v30  ;;  %v2981_v54 = vmul.f32 -1.442695, %v2625_v47 }
 0x8f1   :  { %v2980_v46 = vmul.f32 -1.442695, %v2556_v38 }
 0x8f2   :  { %3889 = vpow2.f32 %v2979_v42 }
 0x8f3   :  { %3891 = vpow2.f32 %v2980_v46 }
 0x8f4   :  { %3893 = vtanh.f32 %v2627_v50 }
 0x8f5   :  { %3895 = vpow2.f32 %v2981_v54 }
 0x8fc   :  { %v3890_v58 = vpop.eup %3889 }
 0x8fd   :  { %v2638_v59 = vadd.f32 1.0, %v3890_v58  ;;  %v3892_v62 = vpop.eup %3891 }
 0x8fe   :  { %v2639_v2 = vadd.f32 1.0, %v3892_v62  ;;  %v3894_v9 = vpop.eup %3893  ;;  %v2985_v62 = vld [vmem:[%s4801_s5] ss:$0 sm:$0xff] }
 0x8ff   :  { %3897 = vrcp.f32 %v2638_v59  ;;  %v3896_v10 = vpop.eup %3895 }
 0x900   :  { %3899 = vrcp.f32 %v2639_v2  ;;  %v2640_v29 = vadd.f32 1.0, %v3896_v10 }
 0x902   :  { %3901 = vrcp.f32 %v2640_v29 }
 0x909   :  { %v3898_v16 = vpop.eup %3897 }
 0x90a   :  { %v2649_v21 = vmul.f32 %v3898_v16, %v3894_v9  ;;  %v3900_v24 = vpop.eup %3899 }
 0x90b   :  { %v2648_v36 = vmul.f32 %v3900_v24, %v4690_v28 }
 0x90c   :  { %v3902_v43 = vpop.eup %3901 }
 0x90d   :  { %v4730_v37 = vadd.f32 %v2649_v21, %v2648_v36 }
 0x90f   :  { %3903 = vtanh.f32 %v4730_v37 }
 0x919   :  { %v3904_v53 = vpop.eup %3903 }
 0x91a   :  { %v2652_v55 = vmul.f32 %v3904_v53, %v3902_v43 }
 0x91c   :  { %2718 = vmatmul.mubr.f32.vlgmr.msra.gmra.mrb[16].mxu0 %v2652_v55  ;;  %2789 = vmatmul.mubr.f32.vlgmr.msra.gmra.mrb[26].mxu1 %v2652_v55 }
 0x91d   :  { %3680 = vmatpush3.bf16.msra.mxu0 %v3679_v5  ;;  %3035 = vmatprep.mubr.msk.f32.mxu0 %vm3927_vm3, %v3925_v3 }
 0x91e   :  { %3681 = vmatprep.subr.bf16.mxu0 %v3926_v6 }
 0x921   :  { %3683 = vmatpush3.bf16.msra.mxu0 %v3682_v57 }
 0x922   :  { %3684 = vmatprep.subr.bf16.mxu0 %v3926_v6 }
 0x925   :  { %3686 = vmatpush3.bf16.msra.mxu0 %v3685_v13 }
 0x926   :  { %3687 = vmatprep.subr.bf16.mxu0 %v3926_v6 }
 0x929   :  { %3689 = vmatpush3.bf16.msra.mxu0 %v3688_v27 }
 0x92a   :  { %3690 = vmatprep.subr.bf16.mxu0 %v3926_v6 }
 0x92d   :  { %3692 = vmatpush3.bf16.msra.mxu0 %v3691_v33 }
 0x92e   :  { %3693 = vmatprep.subr.bf16.mxu0 %v3926_v6 }
 0x931   :  { %3695 = vmatpush3.bf16.msra.mxu0 %v3694_v18 }
 0x932   :  { %3696 = vmatprep.subr.bf16.mxu0 %v3926_v6 }
 0x935   :  { %3698 = vmatpush3.bf16.msra.mxu0 %v3697_v4 }
 0x936   :  { %3699 = vmatprep.subr.bf16.mxu0 %v3926_v6 }
 0x939   :  { %3701 = vmatpush3.bf16.msra.mxu0 %v3700_v45 }
 0x9ef   :  { %v2719_v48 = vpop.f32.mrb[16].mxu0  ;;  %v2790_v52 = vpop.f32.mrb[26].mxu1 }
 0x9f0   :  { %v2720_v56 = vadd.f32 %v2719_v48, %v4312_v19  ;;  %v2721_v3 = vpop.f32.mrb[17].mxu0  ;;  %v2792_v63 = vpop.f32.mrb[27].mxu1  ;;  %v2791_v25 = vadd.f32 %v2790_v52, %v4318_v39 }
 0x9f1   :  { %v2722_v28 = vadd.f32 %v2721_v3, %v4314_v20  ;;  %v2793_v23 = vadd.f32 %v2792_v63, %v4321_v49 }
 0x9f2   :  { %v2982_v1 = vmul.f32 -1.442695, %v2720_v56  ;;  %v2984_v26 = vmul.f32 -1.442695, %v2791_v25 }
 0x9f3   :  { %v2983_v12 = vmul.f32 -1.442695, %v2722_v28 }
 0x9f4   :  { %3905 = vpow2.f32 %v2982_v1 }
 0x9f5   :  { %3907 = vpow2.f32 %v2983_v12 }
 0x9f6   :  { %3909 = vtanh.f32 %v2793_v23 }
 0x9f7   :  { %3911 = vpow2.f32 %v2984_v26 }
 0x9fe   :  { %v3906_v30 = vpop.eup %3905 }
 0x9ff   :  { %v2804_v34 = vadd.f32 1.0, %v3906_v30  ;;  %v3908_v35 = vpop.eup %3907 }
 0xa00   :  { %v2805_v19 = vadd.f32 1.0, %v3908_v35  ;;  %v3910_v38 = vpop.eup %3909 }
 0xa01   :  { %3913 = vrcp.f32 %v2804_v34  ;;  %v3912_v42 = vpop.eup %3911 }
 0xa02   :  { %3915 = vrcp.f32 %v2805_v19  ;;  %v2806_v50 = vadd.f32 1.0, %v3912_v42 }
 0xa04   :  { %3917 = vrcp.f32 %v2806_v50 }
 0xa0b   :  { %v3914_v20 = vpop.eup %3913 }
 0xa0c   :  { %v2815_v46 = vmul.f32 %v3914_v20, %v3910_v38  ;;  %v3916_v47 = vpop.eup %3915 }
 0xa0d   :  { %v2814_v54 = vmul.f32 %v3916_v47, %v4730_v37 }
 0xa0e   :  { %v3918_v49 = vpop.eup %3917 }
 0xa0f   :  { %v2816_v39 = vadd.f32 %v2815_v46, %v2814_v54 }
 0xa11   :  { %3919 = vtanh.f32 %v2816_v39 }
 0xa1b   :  { %v3920_v58 = vpop.eup %3919 }
 0xa1c   :  { %v2818_v59 = vmul.f32 %v3920_v58, %v3918_v49 }
 0xa1e   :  { %3036 = vmatmul.mubr.f32.vlgmr.msra.gmra.mrb[18].mxu0 %v2818_v59 }
 0xaf1   :  { %v2908_v2 = vpop.f32.mrb[18].mxu0 }
 0xaf2   :  { %v2909_v9 = vadd.f32 %v2985_v62, %v2908_v2  ;;  %v3037_v10 = vpop.f32.mrb[19].mxu0 }
 0xaf4   :  { %v2913_v16 = vsel %vm2912_vm4, %v2909_v9, -inf }
 0xaf5   :  { %2914 = vmax.xlane.f32.xlu0 %v2913_v16 }
 0xb82   :  { %v2915_v21 = vpop.xlane.xlu0 %2914 }
 0xb83   :  { %v2916_v24 = vsub.f32 %v2909_v9, %v2915_v21 }
 0xb85   :  { %v2917_v29 = vmul.f32 1.442695, %v2916_v24 }
 0xb87   :  { %3921 = vpow2.f32 %v2917_v29 }
 0xb91   :  { %v3922_v36 = vpop.eup %3921 }
 0xb92   :  { %v2919_v37 = vsel %vm2912_vm4, %v3922_v36, 0.0 }
 0xb93   :  { %2920 = vadd.xlane.f32.xlu0 %v2919_v37 }
 0xc20   :  { %v2921_v43 = vpop.xlane.xlu0 %2920 }
 0xc21   :  { %3923 = vlog2.f32 %v2921_v43 }
 0xc2b   :  { %v3924_v53 = vpop.eup %3923 }
 0xc2c   :  { %v2923_v55 = vmul.f32 0.6931472, %v3924_v53 }
 0xc2e   :  { %v2924_v60 = vsub.f32 %v2916_v24, %v2923_v55 }
 0xc30   :  { %2925 = vst.msk [vmem:[%s4802_s6] sm:$0xff] %vm2912_vm4, %v2924_v60 }

</bundles_post_ra>
